<compile_context>
chip_gen: v7x
topology: tpu7x:2x2x1
jax: 0.10.0
libtpu: 0.0.40
codegen_flags: <defaults>
</compile_context>

<pallas_src>
import jax
import jax.numpy as jnp
from jax.experimental import pallas as pl
from jax.experimental.pallas import tpu as pltpu


# -----------------------------------------------------------------------------
# Fused kernel.
# -----------------------------------------------------------------------------
def attn_decoder_kernel(emb_ref, h0_ref, wih_ref, whh_ref, bih_ref, bhh_ref,
                        enc_ref, wq_ref, wk_ref, ba_ref, wv_ref,
                        wcx_ref, wcc_ref, bc_ref, bo_ref, wo_hbm,
                        out_ref, h_out_ref, attn_ref,
                        x_tm, wo_buf, wo_sem):
    f32, bf16 = jnp.float32, jnp.bfloat16
    B, H = h0_ref.shape
    TB = emb_ref.shape[0]
    T = TB // B
    S = enc_ref.shape[1]
    NV, _, TV = wo_hbm.shape            # out weight: NV slabs of (H, TV), bf16, in HBM

    # ---- Kick off the streamed `out`-weight DMAs immediately so they overlap the
    #      serial GRU recurrence + attention phase (double-buffered). ----
    pltpu.make_async_copy(wo_hbm.at[0], wo_buf.at[0], wo_sem.at[0]).start()
    if NV > 1:
        pltpu.make_async_copy(wo_hbm.at[1], wo_buf.at[1], wo_sem.at[1]).start()

    # ---- GRU over time (time-major, row = t*B + b).  Input->hidden projections
    #      hoisted into ONE fused (T*B,H)@(H,3H) matmul; hidden->hidden is ONE
    #      fused (B,H)@(H,3H) matmul per step.  Gate order [r, z, n]. ----
    gi = jnp.dot(emb_ref[...], wih_ref[...], preferred_element_type=f32) + bih_ref[...]
    h = h0_ref[...]                                               # (B, H) f32
    for t in range(T):                                            # T small & static -> unrolled
        lo = t * B
        gh = jnp.dot(h.astype(bf16), whh_ref[...],
                     preferred_element_type=f32) + bhh_ref[...]   # (B, 3H)
        gi_t = gi[lo:lo + B, :]                                   # (B, 3H)
        r = jax.nn.sigmoid(gi_t[:, 0:H] + gh[:, 0:H])
        z = jax.nn.sigmoid(gi_t[:, H:2 * H] + gh[:, H:2 * H])
        n = jnp.tanh(gi_t[:, 2 * H:3 * H] + r * gh[:, 2 * H:3 * H])
        h = (1.0 - z) * n + z * h
        x_tm[lo:lo + B, :] = h                                    # dense (B, H) store per step
    h_out_ref[...] = h                                            # single final-hidden store

    # ---- Reorganize ONCE: time-major (T*B,H) -> batch-major (B*T,H) via strided reads. ----
    xf = jnp.concatenate([x_tm[pl.ds(b, T, stride=B), :] for b in range(B)], axis=0)
    xf_bf = xf.astype(bf16)

    # ---- Additive attention.  Query/key projections hoisted into two big matmuls. ----
    q = jnp.dot(xf_bf, wq_ref[...], preferred_element_type=f32)           # (B*T, A)
    enc = enc_ref[...]                                                    # (B, S, H) bf16
    k = jnp.dot(enc.reshape(B * S, H), wk_ref[...],
                preferred_element_type=f32)                               # (B*S, A)
    wv = wv_ref[...]                                                      # (1, A)
    aw_list, ctx_list = [], []
    for b in range(B):                                                    # B small & static
        q_b = q[b * T:(b + 1) * T, :]                                     # (T, A)
        k_b = k[b * S:(b + 1) * S, :]                                     # (S, A)
        hid = jnp.tanh(q_b[:, None, :] + k_b[None, :, :] + ba_ref[...])   # (T, S, A)
        # w: A->1 projection as VPU multiply + lane reduce.  Its scalar bias is
        # dropped: softmax is shift-invariant so it cannot change any output.
        logits = jnp.sum(hid * wv, axis=-1)                               # (T, S)
        mx = jnp.max(logits, axis=-1, keepdims=True)
        e = jnp.exp(logits - mx)
        aw = e / jnp.sum(e, axis=-1, keepdims=True)                       # (T, S)
        aw_list.append(aw)
        ctx_list.append(jnp.dot(aw.astype(bf16), enc[b],
                                preferred_element_type=f32))              # (T, H)
    attn_ref[...] = jnp.concatenate(aw_list, axis=0)                      # ONE (B*T, S) store
    ctx = jnp.concatenate(ctx_list, axis=0)                               # (B*T, H)

    # ---- attn_combine (split weights -> no lane-axis concat). ----
    comb = (jnp.dot(xf_bf, wcx_ref[...], preferred_element_type=f32)
            + jnp.dot(ctx.astype(bf16), wcc_ref[...], preferred_element_type=f32)
            + bc_ref[...])                                                # (B*T, H)
    comb_bf = comb.astype(bf16)

    # ---- out projection + log_softmax, streamed over V tiles with an online
    #      logsumexp; wo slab DMAs double-buffered (started above / per-iter). ----
    m = jnp.full((TB, 1), -jnp.inf, dtype=f32)
    s = jnp.zeros((TB, 1), dtype=f32)
    for v in range(NV):                                                   # NV static -> unrolled
        slot = v % 2
        pltpu.make_async_copy(wo_hbm.at[v], wo_buf.at[slot], wo_sem.at[slot]).wait()
        lt = jnp.dot(comb_bf, wo_buf[slot],
                     preferred_element_type=f32) + bo_ref[v]              # (B*T, TV)
        if v + 2 < NV:                                                    # prefetch next slab
            pltpu.make_async_copy(wo_hbm.at[v + 2], wo_buf.at[slot], wo_sem.at[slot]).start()
        out_ref[:, v * TV:(v + 1) * TV] = lt                              # raw logits
        m_new = jnp.maximum(m, jnp.max(lt, axis=-1, keepdims=True))
        s = s * jnp.exp(m - m_new) + jnp.sum(jnp.exp(lt - m_new), axis=-1, keepdims=True)
        m = m_new
    lse = m + jnp.log(s)
    out_ref[...] = out_ref[...] - lse                                     # log_softmax finalize


# -----------------------------------------------------------------------------
# Wrapper around pallas_call.
# -----------------------------------------------------------------------------
def run_attn_decoder(emb_flat, h0, enc_bf16, p):
    TB, H = emb_flat.shape
    B = h0.shape[0]
    S = enc_bf16.shape[1]
    NV, _, TV = p["wo_tiles"].shape
    V = NV * TV

    vmem = pl.BlockSpec(memory_space=pltpu.MemorySpace.VMEM)
    any_spec = pl.BlockSpec(memory_space=pl.ANY)          # wo stays in HBM, streamed manually

    # Size the scoped-VMEM limit to the resident working set (+ headroom); the
    # (H, V) out weight is streamed from HBM and never fully resident.
    resident = [emb_flat, h0, p["w_ih"], p["w_hh"], p["b_ih"], p["b_hh"], enc_bf16,
                p["wq_t"], p["wk_t"], p["b_attn"], p["wv_row"],
                p["wc_x"], p["wc_ctx"], p["b_c"], p["bo_tiles"]]
    vmem_bytes = sum(int(a.size) * a.dtype.itemsize for a in resident)
    vmem_bytes += 4 * TB * (V + 2 * H + S)                # f32 outputs + x_tm scratch
    vmem_bytes += 2 * 2 * H * TV                          # double-buffered bf16 wo slabs
    vmem_limit = int(min(max(4 * vmem_bytes, 16 << 20), 48 << 20))

    return pl.pallas_call(
        attn_decoder_kernel,
        out_shape=(
            jax.ShapeDtypeStruct((TB, V), jnp.float32),   # log-probs, batch-major flat
            jax.ShapeDtypeStruct((B, H), jnp.float32),    # final hidden
            jax.ShapeDtypeStruct((TB, S), jnp.float32),   # attention weights, batch-major flat
        ),
        in_specs=[vmem] * 15 + [any_spec],
        out_specs=(vmem, vmem, vmem),
        scratch_shapes=[
            pltpu.VMEM((TB, H), jnp.float32),             # GRU outputs, time-major
            pltpu.VMEM((2, H, TV), jnp.bfloat16),         # double-buffered wo slabs
            pltpu.SemaphoreType.DMA((2,)),
        ],
        compiler_params=pltpu.CompilerParams(vmem_limit_bytes=vmem_limit),
    )(emb_flat, h0,
      p["w_ih"], p["w_hh"], p["b_ih"], p["b_hh"],
      enc_bf16, p["wq_t"], p["wk_t"], p["b_attn"], p["wv_row"],
      p["wc_x"], p["wc_ctx"], p["b_c"], p["bo_tiles"], p["wo_tiles"])


# -----------------------------------------------------------------------------
# Parameters + full forward pass.
# -----------------------------------------------------------------------------
def _v_tile_size(V):
    for t in (512, 256, 128):
        if V % t == 0 and V // t >= 2:
            return t
    return V


def init_params(key, hidden_size, output_size):
    H, V = hidden_size, output_size
    A = H // 2
    bf16 = jnp.bfloat16
    ks = jax.random.split(key, 16)

    def u(k, shape, scale, dtype=jnp.float32):
        return jax.random.uniform(k, shape, jnp.float32, -scale, scale).astype(dtype)

    s_h = 1.0 / float(H) ** 0.5
    s_2h = 1.0 / float(2 * H) ** 0.5
    s_a = 1.0 / float(A) ** 0.5

    tv = _v_tile_size(V)
    nv = V // tv
    wo_t = u(ks[13], (H, V), s_h)                         # out: Linear(H, V), pre-transposed
    return {
        "embedding": jax.random.normal(ks[0], (V, H), jnp.float32).astype(bf16),
        # GRU (gate order [r, z, n]); fused per-gate weights along the lane axis,
        # stored pre-transposed (in, 3*out) and in bf16 (MXU operands).
        "w_ih": u(ks[1], (H, 3 * H), s_h, bf16),
        "w_hh": u(ks[2], (H, 3 * H), s_h, bf16),
        "b_ih": u(ks[3], (1, 3 * H), s_h),
        "b_hh": u(ks[4], (1, 3 * H), s_h),
        # AdditiveAttention (q_dim=k_dim=H, attn_dim=A=H//2).
        "wq_t": u(ks[5], (H, A), s_h, bf16),
        "wk_t": u(ks[6], (H, A), s_h, bf16),
        "b_attn": u(ks[7], (1, A), 0.1),
        "wv_row": u(ks[8], (1, A), s_a),                  # w.weight as a row (VPU reduce)
        # w.bias omitted: softmax is shift-invariant -> it cannot affect outputs.
        # attn_combine: Linear(2H, H) split into x-half and context-half.
        "wc_x": u(ks[10], (H, H), s_2h, bf16),
        "wc_ctx": u(ks[11], (H, H), s_2h, bf16),
        "b_c": u(ks[12], (1, H), s_2h),
        # out: pre-tiled over V so the kernel streams (H, TILE_V) slabs via leading-axis DMA.
        "wo_tiles": wo_t.reshape(H, nv, tv).transpose(1, 0, 2).astype(bf16),
        "bo_tiles": u(ks[14], (1, V), s_h).reshape(nv, 1, tv),
    }


@jax.jit
def attn_decoder_forward(params, token_ids, hidden, encoder_outputs):
    """token_ids: (B, T) int32; hidden: (B, H); encoder_outputs: (B, S, H) f32."""
    B, T = token_ids.shape
    V = params["embedding"].shape[0]
    S = encoder_outputs.shape[1]
    # Embedding lookup directly in time-major-flattened order (row = t*B + b) so the
    # kernel slices GRU timesteps as contiguous dense blocks.
    flat_ids = jnp.transpose(token_ids).reshape(B * T)
    emb_flat = jnp.take(params["embedding"], flat_ids, axis=0)            # (T*B, H) bf16
    enc_bf16 = encoder_outputs.astype(jnp.bfloat16)                       # matmul-only operand
    # TODO(synk): dropout on the embedding is identity (eval mode); training-mode RNG masking not implemented.
    logp_flat, h_final, attn_flat = run_attn_decoder(emb_flat, hidden, enc_bf16, params)
    # Kernel outputs are batch-major flat -> pure reshapes (no transpose needed).
    return logp_flat.reshape(B, T, V), h_final, attn_flat.reshape(B, T, S)


if __name__ == "__main__":
    B, T, S = 2, 4, 8          # batch, decoder steps, encoder length
    H, V = 128, 256            # hidden (128 -> aligned gate slices), vocab (2 V-tiles of 128)

    key = jax.random.PRNGKey(0)
    kp, k1, k2, k3 = jax.random.split(key, 4)

    params = init_params(kp, H, V)
    token_ids = jax.random.randint(k1, (B, T), 0, V, dtype=jnp.int32)
    hidden0 = jax.random.normal(k2, (B, H), jnp.float32)
    encoder_outputs = jax.random.normal(k3, (B, S, H), jnp.float32)

    log_probs, h_final, attn_weights = attn_decoder_forward(
        params, token_ids, hidden0, encoder_outputs)
    jax.block_until_ready((log_probs, h_final, attn_weights))

    assert log_probs.shape == (B, T, V)
    assert h_final.shape == (B, H)
    assert attn_weights.shape == (B, T, S)
    # sanity: softmax rows sum to 1, log_softmax rows logsumexp to ~0, all finite
    assert jnp.allclose(attn_weights.sum(-1), 1.0, atol=1e-5)
    assert jnp.allclose(jax.scipy.special.logsumexp(log_probs, axis=-1), 0.0, atol=1e-4)
    assert bool(jnp.all(jnp.isfinite(log_probs)))

    print("KERNEL_OK")
</pallas_src>

<mosaic_0001>
module attributes {stable_mosaic.version = 11 : i64} {
  func.func @attn_decoder_kernel(%arg0: memref<8x128xbf16, #tpu.memory_space<vmem>>, %arg1: memref<2x128xf32, #tpu.memory_space<vmem>>, %arg2: memref<128x384xbf16, #tpu.memory_space<vmem>>, %arg3: memref<128x384xbf16, #tpu.memory_space<vmem>>, %arg4: memref<1x384xf32, #tpu.memory_space<vmem>>, %arg5: memref<1x384xf32, #tpu.memory_space<vmem>>, %arg6: memref<2x8x128xbf16, #tpu.memory_space<vmem>>, %arg7: memref<128x64xbf16, #tpu.memory_space<vmem>>, %arg8: memref<128x64xbf16, #tpu.memory_space<vmem>>, %arg9: memref<1x64xf32, #tpu.memory_space<vmem>>, %arg10: memref<1x64xf32, #tpu.memory_space<vmem>>, %arg11: memref<128x128xbf16, #tpu.memory_space<vmem>>, %arg12: memref<128x128xbf16, #tpu.memory_space<vmem>>, %arg13: memref<1x128xf32, #tpu.memory_space<vmem>>, %arg14: memref<2x1x128xf32, #tpu.memory_space<vmem>>, %arg15: memref<2x128x128xbf16, #tpu.memory_space<any>>, %arg16: memref<8x256xf32, #tpu.memory_space<vmem>>, %arg17: memref<2x128xf32, #tpu.memory_space<vmem>>, %arg18: memref<8x8xf32, #tpu.memory_space<vmem>>, %arg19: memref<8x128xf32, #tpu.memory_space<vmem>>, %arg20: memref<2x128x128xbf16, #tpu.memory_space<vmem>>, %arg21: memref<2x!tpu.dma_semaphore, #tpu.memory_space<semaphore_mem>>) attributes {dimension_semantics = [], scalar_prefetch = 0 : i64, scratch_operands = 3 : i64, tpu.core_type = #tpu.core_type<tc>} {
    %c0_i32 = arith.constant 0 : i32
    %c0_i32_0 = arith.constant 0 : i32
    %c0_i32_1 = arith.constant 0 : i32
    %c0_i32_2 = arith.constant 0 : i32
    %c0_i32_3 = arith.constant 0 : i32
    %0 = tpu.memref_slice %arg15[%c0_i32, %c0_i32_2, %c0_i32_3] : memref<2x128x128xbf16, #tpu.memory_space<any>> -> memref<1x128x128xbf16, #tpu.memory_space<any>>
    %1 = tpu.memref_squeeze %0 : memref<1x128x128xbf16, #tpu.memory_space<any>> -> memref<128x128xbf16, #tpu.memory_space<any>>
    %c0_i32_4 = arith.constant 0 : i32
    %c0_i32_5 = arith.constant 0 : i32
    %2 = tpu.memref_slice %arg20[%c0_i32_0, %c0_i32_4, %c0_i32_5] : memref<2x128x128xbf16, #tpu.memory_space<vmem>> -> memref<1x128x128xbf16, #tpu.memory_space<vmem>>
    %3 = tpu.memref_squeeze %2 : memref<1x128x128xbf16, #tpu.memory_space<vmem>> -> memref<128x128xbf16, #tpu.memory_space<vmem>>
    %4 = tpu.memref_slice %arg21[%c0_i32_1] : memref<2x!tpu.dma_semaphore, #tpu.memory_space<semaphore_mem>> -> memref<1x!tpu.dma_semaphore, #tpu.memory_space<semaphore_mem>>
    %5 = tpu.memref_squeeze %4 : memref<1x!tpu.dma_semaphore, #tpu.memory_space<semaphore_mem>> -> memref<!tpu.dma_semaphore, #tpu.memory_space<semaphore_mem>>
    tpu.enqueue_dma source(%1 : memref<128x128xbf16, #tpu.memory_space<any>>) target(%3 : memref<128x128xbf16, #tpu.memory_space<vmem>>) target_semaphore(%5 : memref<!tpu.dma_semaphore, #tpu.memory_space<semaphore_mem>>)
    %c1_i32 = arith.constant 1 : i32
    %c1_i32_6 = arith.constant 1 : i32
    %c1_i32_7 = arith.constant 1 : i32
    %c0_i32_8 = arith.constant 0 : i32
    %c0_i32_9 = arith.constant 0 : i32
    %6 = tpu.memref_slice %arg15[%c1_i32, %c0_i32_8, %c0_i32_9] : memref<2x128x128xbf16, #tpu.memory_space<any>> -> memref<1x128x128xbf16, #tpu.memory_space<any>>
    %7 = tpu.memref_squeeze %6 : memref<1x128x128xbf16, #tpu.memory_space<any>> -> memref<128x128xbf16, #tpu.memory_space<any>>
    %c0_i32_10 = arith.constant 0 : i32
    %c0_i32_11 = arith.constant 0 : i32
    %8 = tpu.memref_slice %arg20[%c1_i32_6, %c0_i32_10, %c0_i32_11] : memref<2x128x128xbf16, #tpu.memory_space<vmem>> -> memref<1x128x128xbf16, #tpu.memory_space<vmem>>
    %9 = tpu.memref_squeeze %8 : memref<1x128x128xbf16, #tpu.memory_space<vmem>> -> memref<128x128xbf16, #tpu.memory_space<vmem>>
    %10 = tpu.memref_slice %arg21[%c1_i32_7] : memref<2x!tpu.dma_semaphore, #tpu.memory_space<semaphore_mem>> -> memref<1x!tpu.dma_semaphore, #tpu.memory_space<semaphore_mem>>
    %11 = tpu.memref_squeeze %10 : memref<1x!tpu.dma_semaphore, #tpu.memory_space<semaphore_mem>> -> memref<!tpu.dma_semaphore, #tpu.memory_space<semaphore_mem>>
    tpu.enqueue_dma source(%7 : memref<128x128xbf16, #tpu.memory_space<any>>) target(%9 : memref<128x128xbf16, #tpu.memory_space<vmem>>) target_semaphore(%11 : memref<!tpu.dma_semaphore, #tpu.memory_space<semaphore_mem>>)
    %c0 = arith.constant 0 : index
    %c0_12 = arith.constant 0 : index
    %12 = vector.load %arg0[%c0, %c0_12] : memref<8x128xbf16, #tpu.memory_space<vmem>>, vector<8x128xbf16>
    %c0_13 = arith.constant 0 : index
    %c0_14 = arith.constant 0 : index
    %13 = vector.load %arg2[%c0_13, %c0_14] : memref<128x384xbf16, #tpu.memory_space<vmem>>, vector<128x384xbf16>
    %cst = arith.constant dense<0.000000e+00> : vector<8x384xf32>
    %14 = tpu.matmul %12, %13, %cst {dimension_numbers = #tpu.dot_dimension_numbers<[1], [0], [0], [1], [0, 0, 1, 1], [], []>} : vector<8x128xbf16>, vector<128x384xbf16>, vector<8x384xf32> -> vector<8x384xf32>
    %c0_15 = arith.constant 0 : index
    %c0_16 = arith.constant 0 : index
    %15 = vector.load %arg4[%c0_15, %c0_16] : memref<1x384xf32, #tpu.memory_space<vmem>>, vector<1x384xf32>
    %16 = vector.broadcast %15 : vector<1x384xf32> to vector<8x384xf32>
    %17 = arith.addf %14, %16 : vector<8x384xf32>
    %c0_17 = arith.constant 0 : index
    %c0_18 = arith.constant 0 : index
    %18 = vector.load %arg1[%c0_17, %c0_18] : memref<2x128xf32, #tpu.memory_space<vmem>>, vector<2x128xf32>
    %19 = arith.truncf %18 : vector<2x128xf32> to vector<2x128xbf16>
    %c0_19 = arith.constant 0 : index
    %c0_20 = arith.constant 0 : index
    %20 = vector.load %arg3[%c0_19, %c0_20] : memref<128x384xbf16, #tpu.memory_space<vmem>>, vector<128x384xbf16>
    %cst_21 = arith.constant dense<0.000000e+00> : vector<2x384xf32>
    %21 = tpu.matmul %19, %20, %cst_21 {dimension_numbers = #tpu.dot_dimension_numbers<[1], [0], [0], [1], [0, 0, 1, 1], [], []>} : vector<2x128xbf16>, vector<128x384xbf16>, vector<2x384xf32> -> vector<2x384xf32>
    %c0_22 = arith.constant 0 : index
    %c0_23 = arith.constant 0 : index
    %22 = vector.load %arg5[%c0_22, %c0_23] : memref<1x384xf32, #tpu.memory_space<vmem>>, vector<1x384xf32>
    %23 = vector.broadcast %22 : vector<1x384xf32> to vector<2x384xf32>
    %24 = arith.addf %21, %23 : vector<2x384xf32>
    %25 = vector.extract_strided_slice %17 {offsets = [0, 0], sizes = [2, 384], strides = [1, 1]} : vector<8x384xf32> to vector<2x384xf32>
    %26 = vector.extract_strided_slice %25 {offsets = [0, 0], sizes = [2, 128], strides = [1, 1]} : vector<2x384xf32> to vector<2x128xf32>
    %27 = vector.extract_strided_slice %24 {offsets = [0, 0], sizes = [2, 128], strides = [1, 1]} : vector<2x384xf32> to vector<2x128xf32>
    %28 = arith.addf %26, %27 : vector<2x128xf32>
    %29 = arith.negf %28 : vector<2x128xf32>
    %30 = math.exp %29 : vector<2x128xf32>
    %cst_24 = arith.constant 1.000000e+00 : f32
    %31 = vector.broadcast %cst_24 : f32 to vector<2x128xf32>
    %32 = arith.addf %31, %30 : vector<2x128xf32>
    %33 = arith.divf %31, %32 : vector<2x128xf32>
    %34 = vector.extract_strided_slice %25 {offsets = [0, 128], sizes = [2, 128], strides = [1, 1]} : vector<2x384xf32> to vector<2x128xf32>
    %35 = vector.extract_strided_slice %24 {offsets = [0, 128], sizes = [2, 128], strides = [1, 1]} : vector<2x384xf32> to vector<2x128xf32>
    %36 = arith.addf %34, %35 : vector<2x128xf32>
    %37 = arith.negf %36 : vector<2x128xf32>
    %38 = math.exp %37 : vector<2x128xf32>
    %cst_25 = arith.constant 1.000000e+00 : f32
    %39 = vector.broadcast %cst_25 : f32 to vector<2x128xf32>
    %40 = arith.addf %39, %38 : vector<2x128xf32>
    %41 = arith.divf %39, %40 : vector<2x128xf32>
    %42 = vector.extract_strided_slice %25 {offsets = [0, 256], sizes = [2, 128], strides = [1, 1]} : vector<2x384xf32> to vector<2x128xf32>
    %43 = vector.extract_strided_slice %24 {offsets = [0, 256], sizes = [2, 128], strides = [1, 1]} : vector<2x384xf32> to vector<2x128xf32>
    %44 = arith.mulf %33, %43 : vector<2x128xf32>
    %45 = arith.addf %42, %44 : vector<2x128xf32>
    %46 = math.tanh %45 : vector<2x128xf32>
    %cst_26 = arith.constant 1.000000e+00 : f32
    %47 = vector.broadcast %cst_26 : f32 to vector<2x128xf32>
    %48 = arith.subf %47, %41 : vector<2x128xf32>
    %49 = arith.mulf %48, %46 : vector<2x128xf32>
    %50 = arith.mulf %41, %18 : vector<2x128xf32>
    %51 = arith.addf %49, %50 : vector<2x128xf32>
    %c0_27 = arith.constant 0 : index
    %c0_28 = arith.constant 0 : index
    %52 = vector.load %arg19[%c0_27, %c0_28] : memref<8x128xf32, #tpu.memory_space<vmem>>, vector<2x128xf32>
    tpu.vector_store %arg19[%c0_27, %c0_28], %51 {strides = array<i32>} : memref<8x128xf32, #tpu.memory_space<vmem>>, vector<2x128xf32>,
    %53 = arith.truncf %51 : vector<2x128xf32> to vector<2x128xbf16>
    %c0_29 = arith.constant 0 : index
    %c0_30 = arith.constant 0 : index
    %54 = vector.load %arg3[%c0_29, %c0_30] : memref<128x384xbf16, #tpu.memory_space<vmem>>, vector<128x384xbf16>
    %cst_31 = arith.constant dense<0.000000e+00> : vector<2x384xf32>
    %55 = tpu.matmul %53, %54, %cst_31 {dimension_numbers = #tpu.dot_dimension_numbers<[1], [0], [0], [1], [0, 0, 1, 1], [], []>} : vector<2x128xbf16>, vector<128x384xbf16>, vector<2x384xf32> -> vector<2x384xf32>
    %c0_32 = arith.constant 0 : index
    %c0_33 = arith.constant 0 : index
    %56 = vector.load %arg5[%c0_32, %c0_33] : memref<1x384xf32, #tpu.memory_space<vmem>>, vector<1x384xf32>
    %57 = vector.broadcast %56 : vector<1x384xf32> to vector<2x384xf32>
    %58 = arith.addf %55, %57 : vector<2x384xf32>
    %59 = vector.extract_strided_slice %17 {offsets = [2, 0], sizes = [2, 384], strides = [1, 1]} : vector<8x384xf32> to vector<2x384xf32>
    %60 = vector.extract_strided_slice %59 {offsets = [0, 0], sizes = [2, 128], strides = [1, 1]} : vector<2x384xf32> to vector<2x128xf32>
    %61 = vector.extract_strided_slice %58 {offsets = [0, 0], sizes = [2, 128], strides = [1, 1]} : vector<2x384xf32> to vector<2x128xf32>
    %62 = arith.addf %60, %61 : vector<2x128xf32>
    %63 = arith.negf %62 : vector<2x128xf32>
    %64 = math.exp %63 : vector<2x128xf32>
    %cst_34 = arith.constant 1.000000e+00 : f32
    %65 = vector.broadcast %cst_34 : f32 to vector<2x128xf32>
    %66 = arith.addf %65, %64 : vector<2x128xf32>
    %67 = arith.divf %65, %66 : vector<2x128xf32>
    %68 = vector.extract_strided_slice %59 {offsets = [0, 128], sizes = [2, 128], strides = [1, 1]} : vector<2x384xf32> to vector<2x128xf32>
    %69 = vector.extract_strided_slice %58 {offsets = [0, 128], sizes = [2, 128], strides = [1, 1]} : vector<2x384xf32> to vector<2x128xf32>
    %70 = arith.addf %68, %69 : vector<2x128xf32>
    %71 = arith.negf %70 : vector<2x128xf32>
    %72 = math.exp %71 : vector<2x128xf32>
    %cst_35 = arith.constant 1.000000e+00 : f32
    %73 = vector.broadcast %cst_35 : f32 to vector<2x128xf32>
    %74 = arith.addf %73, %72 : vector<2x128xf32>
    %75 = arith.divf %73, %74 : vector<2x128xf32>
    %76 = vector.extract_strided_slice %59 {offsets = [0, 256], sizes = [2, 128], strides = [1, 1]} : vector<2x384xf32> to vector<2x128xf32>
    %77 = vector.extract_strided_slice %58 {offsets = [0, 256], sizes = [2, 128], strides = [1, 1]} : vector<2x384xf32> to vector<2x128xf32>
    %78 = arith.mulf %67, %77 : vector<2x128xf32>
    %79 = arith.addf %76, %78 : vector<2x128xf32>
    %80 = math.tanh %79 : vector<2x128xf32>
    %cst_36 = arith.constant 1.000000e+00 : f32
    %81 = vector.broadcast %cst_36 : f32 to vector<2x128xf32>
    %82 = arith.subf %81, %75 : vector<2x128xf32>
    %83 = arith.mulf %82, %80 : vector<2x128xf32>
    %84 = arith.mulf %75, %51 : vector<2x128xf32>
    %85 = arith.addf %83, %84 : vector<2x128xf32>
    %c2 = arith.constant 2 : index
    %c0_37 = arith.constant 0 : index
    %86 = vector.load %arg19[%c2, %c0_37] : memref<8x128xf32, #tpu.memory_space<vmem>>, vector<2x128xf32>
    tpu.vector_store %arg19[%c2, %c0_37], %85 {strides = array<i32>} : memref<8x128xf32, #tpu.memory_space<vmem>>, vector<2x128xf32>,
    %87 = arith.truncf %85 : vector<2x128xf32> to vector<2x128xbf16>
    %c0_38 = arith.constant 0 : index
    %c0_39 = arith.constant 0 : index
    %88 = vector.load %arg3[%c0_38, %c0_39] : memref<128x384xbf16, #tpu.memory_space<vmem>>, vector<128x384xbf16>
    %cst_40 = arith.constant dense<0.000000e+00> : vector<2x384xf32>
    %89 = tpu.matmul %87, %88, %cst_40 {dimension_numbers = #tpu.dot_dimension_numbers<[1], [0], [0], [1], [0, 0, 1, 1], [], []>} : vector<2x128xbf16>, vector<128x384xbf16>, vector<2x384xf32> -> vector<2x384xf32>
    %c0_41 = arith.constant 0 : index
    %c0_42 = arith.constant 0 : index
    %90 = vector.load %arg5[%c0_41, %c0_42] : memref<1x384xf32, #tpu.memory_space<vmem>>, vector<1x384xf32>
    %91 = vector.broadcast %90 : vector<1x384xf32> to vector<2x384xf32>
    %92 = arith.addf %89, %91 : vector<2x384xf32>
    %93 = vector.extract_strided_slice %17 {offsets = [4, 0], sizes = [2, 384], strides = [1, 1]} : vector<8x384xf32> to vector<2x384xf32>
    %94 = vector.extract_strided_slice %93 {offsets = [0, 0], sizes = [2, 128], strides = [1, 1]} : vector<2x384xf32> to vector<2x128xf32>
    %95 = vector.extract_strided_slice %92 {offsets = [0, 0], sizes = [2, 128], strides = [1, 1]} : vector<2x384xf32> to vector<2x128xf32>
    %96 = arith.addf %94, %95 : vector<2x128xf32>
    %97 = arith.negf %96 : vector<2x128xf32>
    %98 = math.exp %97 : vector<2x128xf32>
    %cst_43 = arith.constant 1.000000e+00 : f32
    %99 = vector.broadcast %cst_43 : f32 to vector<2x128xf32>
    %100 = arith.addf %99, %98 : vector<2x128xf32>
    %101 = arith.divf %99, %100 : vector<2x128xf32>
    %102 = vector.extract_strided_slice %93 {offsets = [0, 128], sizes = [2, 128], strides = [1, 1]} : vector<2x384xf32> to vector<2x128xf32>
    %103 = vector.extract_strided_slice %92 {offsets = [0, 128], sizes = [2, 128], strides = [1, 1]} : vector<2x384xf32> to vector<2x128xf32>
    %104 = arith.addf %102, %103 : vector<2x128xf32>
    %105 = arith.negf %104 : vector<2x128xf32>
    %106 = math.exp %105 : vector<2x128xf32>
    %cst_44 = arith.constant 1.000000e+00 : f32
    %107 = vector.broadcast %cst_44 : f32 to vector<2x128xf32>
    %108 = arith.addf %107, %106 : vector<2x128xf32>
    %109 = arith.divf %107, %108 : vector<2x128xf32>
    %110 = vector.extract_strided_slice %93 {offsets = [0, 256], sizes = [2, 128], strides = [1, 1]} : vector<2x384xf32> to vector<2x128xf32>
    %111 = vector.extract_strided_slice %92 {offsets = [0, 256], sizes = [2, 128], strides = [1, 1]} : vector<2x384xf32> to vector<2x128xf32>
    %112 = arith.mulf %101, %111 : vector<2x128xf32>
    %113 = arith.addf %110, %112 : vector<2x128xf32>
    %114 = math.tanh %113 : vector<2x128xf32>
    %cst_45 = arith.constant 1.000000e+00 : f32
    %115 = vector.broadcast %cst_45 : f32 to vector<2x128xf32>
    %116 = arith.subf %115, %109 : vector<2x128xf32>
    %117 = arith.mulf %116, %114 : vector<2x128xf32>
    %118 = arith.mulf %109, %85 : vector<2x128xf32>
    %119 = arith.addf %117, %118 : vector<2x128xf32>
    %c4 = arith.constant 4 : index
    %c0_46 = arith.constant 0 : index
    %120 = vector.load %arg19[%c4, %c0_46] : memref<8x128xf32, #tpu.memory_space<vmem>>, vector<2x128xf32>
    tpu.vector_store %arg19[%c4, %c0_46], %119 {strides = array<i32>} : memref<8x128xf32, #tpu.memory_space<vmem>>, vector<2x128xf32>,
    %121 = arith.truncf %119 : vector<2x128xf32> to vector<2x128xbf16>
    %c0_47 = arith.constant 0 : index
    %c0_48 = arith.constant 0 : index
    %122 = vector.load %arg3[%c0_47, %c0_48] : memref<128x384xbf16, #tpu.memory_space<vmem>>, vector<128x384xbf16>
    %cst_49 = arith.constant dense<0.000000e+00> : vector<2x384xf32>
    %123 = tpu.matmul %121, %122, %cst_49 {dimension_numbers = #tpu.dot_dimension_numbers<[1], [0], [0], [1], [0, 0, 1, 1], [], []>} : vector<2x128xbf16>, vector<128x384xbf16>, vector<2x384xf32> -> vector<2x384xf32>
    %c0_50 = arith.constant 0 : index
    %c0_51 = arith.constant 0 : index
    %124 = vector.load %arg5[%c0_50, %c0_51] : memref<1x384xf32, #tpu.memory_space<vmem>>, vector<1x384xf32>
    %125 = vector.broadcast %124 : vector<1x384xf32> to vector<2x384xf32>
    %126 = arith.addf %123, %125 : vector<2x384xf32>
    %127 = vector.extract_strided_slice %17 {offsets = [6, 0], sizes = [2, 384], strides = [1, 1]} : vector<8x384xf32> to vector<2x384xf32>
    %128 = vector.extract_strided_slice %127 {offsets = [0, 0], sizes = [2, 128], strides = [1, 1]} : vector<2x384xf32> to vector<2x128xf32>
    %129 = vector.extract_strided_slice %126 {offsets = [0, 0], sizes = [2, 128], strides = [1, 1]} : vector<2x384xf32> to vector<2x128xf32>
    %130 = arith.addf %128, %129 : vector<2x128xf32>
    %131 = arith.negf %130 : vector<2x128xf32>
    %132 = math.exp %131 : vector<2x128xf32>
    %cst_52 = arith.constant 1.000000e+00 : f32
    %133 = vector.broadcast %cst_52 : f32 to vector<2x128xf32>
    %134 = arith.addf %133, %132 : vector<2x128xf32>
    %135 = arith.divf %133, %134 : vector<2x128xf32>
    %136 = vector.extract_strided_slice %127 {offsets = [0, 128], sizes = [2, 128], strides = [1, 1]} : vector<2x384xf32> to vector<2x128xf32>
    %137 = vector.extract_strided_slice %126 {offsets = [0, 128], sizes = [2, 128], strides = [1, 1]} : vector<2x384xf32> to vector<2x128xf32>
    %138 = arith.addf %136, %137 : vector<2x128xf32>
    %139 = arith.negf %138 : vector<2x128xf32>
    %140 = math.exp %139 : vector<2x128xf32>
    %cst_53 = arith.constant 1.000000e+00 : f32
    %141 = vector.broadcast %cst_53 : f32 to vector<2x128xf32>
    %142 = arith.addf %141, %140 : vector<2x128xf32>
    %143 = arith.divf %141, %142 : vector<2x128xf32>
    %144 = vector.extract_strided_slice %127 {offsets = [0, 256], sizes = [2, 128], strides = [1, 1]} : vector<2x384xf32> to vector<2x128xf32>
    %145 = vector.extract_strided_slice %126 {offsets = [0, 256], sizes = [2, 128], strides = [1, 1]} : vector<2x384xf32> to vector<2x128xf32>
    %146 = arith.mulf %135, %145 : vector<2x128xf32>
    %147 = arith.addf %144, %146 : vector<2x128xf32>
    %148 = math.tanh %147 : vector<2x128xf32>
    %cst_54 = arith.constant 1.000000e+00 : f32
    %149 = vector.broadcast %cst_54 : f32 to vector<2x128xf32>
    %150 = arith.subf %149, %143 : vector<2x128xf32>
    %151 = arith.mulf %150, %148 : vector<2x128xf32>
    %152 = arith.mulf %143, %119 : vector<2x128xf32>
    %153 = arith.addf %151, %152 : vector<2x128xf32>
    %c6 = arith.constant 6 : index
    %c0_55 = arith.constant 0 : index
    %154 = vector.load %arg19[%c6, %c0_55] : memref<8x128xf32, #tpu.memory_space<vmem>>, vector<2x128xf32>
    tpu.vector_store %arg19[%c6, %c0_55], %153 {strides = array<i32>} : memref<8x128xf32, #tpu.memory_space<vmem>>, vector<2x128xf32>,
    %c0_56 = arith.constant 0 : index
    %c0_57 = arith.constant 0 : index
    %155 = vector.load %arg17[%c0_56, %c0_57] : memref<2x128xf32, #tpu.memory_space<vmem>>, vector<2x128xf32>
    tpu.vector_store %arg17[%c0_56, %c0_57], %153 {strides = array<i32>} : memref<2x128xf32, #tpu.memory_space<vmem>>, vector<2x128xf32>,
    %c0_58 = arith.constant 0 : index
    %c0_59 = arith.constant 0 : index
    %156 = tpu.strided_load %arg19[%c0_58, %c0_59] {strides = array<i32: 2, 1>} : memref<8x128xf32, #tpu.memory_space<vmem>>, vector<4x128xf32>
    %c1 = arith.constant 1 : index
    %c0_60 = arith.constant 0 : index
    %157 = tpu.strided_load %arg19[%c1, %c0_60] {strides = array<i32: 2, 1>} : memref<8x128xf32, #tpu.memory_space<vmem>>, vector<4x128xf32>
    %158 = tpu.concatenate %156, %157 in 0 : vector<4x128xf32>, vector<4x128xf32> -> vector<8x128xf32>
    %159 = arith.truncf %158 : vector<8x128xf32> to vector<8x128xbf16>
    %c0_61 = arith.constant 0 : index
    %c0_62 = arith.constant 0 : index
    %160 = vector.load %arg7[%c0_61, %c0_62] : memref<128x64xbf16, #tpu.memory_space<vmem>>, vector<128x64xbf16>
    %cst_63 = arith.constant dense<0.000000e+00> : vector<8x64xf32>
    %161 = tpu.matmul %159, %160, %cst_63 {dimension_numbers = #tpu.dot_dimension_numbers<[1], [0], [0], [1], [0, 0, 1, 1], [], []>} : vector<8x128xbf16>, vector<128x64xbf16>, vector<8x64xf32> -> vector<8x64xf32>
    %c0_64 = arith.constant 0 : index
    %c0_65 = arith.constant 0 : index
    %c0_66 = arith.constant 0 : index
    %162 = vector.load %arg6[%c0_64, %c0_65, %c0_66] : memref<2x8x128xbf16, #tpu.memory_space<vmem>>, vector<2x8x128xbf16>
    %163 = vector.shape_cast %162 : vector<2x8x128xbf16> to vector<16x128xbf16>
    %c0_67 = arith.constant 0 : index
    %c0_68 = arith.constant 0 : index
    %164 = vector.load %arg8[%c0_67, %c0_68] : memref<128x64xbf16, #tpu.memory_space<vmem>>, vector<128x64xbf16>
    %cst_69 = arith.constant dense<0.000000e+00> : vector<16x64xf32>
    %165 = tpu.matmul %163, %164, %cst_69 {dimension_numbers = #tpu.dot_dimension_numbers<[1], [0], [0], [1], [0, 0, 1, 1], [], []>} : vector<16x128xbf16>, vector<128x64xbf16>, vector<16x64xf32> -> vector<16x64xf32>
    %c0_70 = arith.constant 0 : index
    %c0_71 = arith.constant 0 : index
    %166 = vector.load %arg10[%c0_70, %c0_71] : memref<1x64xf32, #tpu.memory_space<vmem>>, vector<1x64xf32>
    %167 = vector.extract_strided_slice %161 {offsets = [0, 0], sizes = [4, 64], strides = [1, 1]} : vector<8x64xf32> to vector<4x64xf32>
    %168 = vector.extract_strided_slice %165 {offsets = [0, 0], sizes = [8, 64], strides = [1, 1]} : vector<16x64xf32> to vector<8x64xf32>
    %169 = vector.shape_cast %167 : vector<4x64xf32> to vector<4x1x64xf32>
    %170 = vector.shape_cast %168 : vector<8x64xf32> to vector<1x8x64xf32>
    %171 = vector.broadcast %169 : vector<4x1x64xf32> to vector<4x8x64xf32>
    %172 = vector.broadcast %170 : vector<1x8x64xf32> to vector<4x8x64xf32>
    %173 = arith.addf %171, %172 : vector<4x8x64xf32>
    %c0_72 = arith.constant 0 : index
    %c0_73 = arith.constant 0 : index
    %174 = vector.load %arg9[%c0_72, %c0_73] : memref<1x64xf32, #tpu.memory_space<vmem>>, vector<1x64xf32>
    %175 = vector.shape_cast %174 : vector<1x64xf32> to vector<1x1x64xf32>
    %176 = vector.broadcast %175 : vector<1x1x64xf32> to vector<4x8x64xf32>
    %177 = arith.addf %173, %176 : vector<4x8x64xf32>
    %178 = math.tanh %177 : vector<4x8x64xf32>
    %179 = vector.shape_cast %166 : vector<1x64xf32> to vector<1x1x64xf32>
    %180 = vector.broadcast %179 : vector<1x1x64xf32> to vector<4x8x64xf32>
    %181 = arith.mulf %178, %180 : vector<4x8x64xf32>
    %cst_74 = arith.constant dense<0.000000e+00> : vector<4x8xf32>
    %182 = vector.multi_reduction <add>, %181, %cst_74 [2] : vector<4x8x64xf32> to vector<4x8xf32>
    %cst_75 = arith.constant dense<0xFF800000> : vector<4xf32>
    %183 = vector.multi_reduction <maximumf>, %182, %cst_75 [1] : vector<4x8xf32> to vector<4xf32>
    %184 = vector.shape_cast %183 : vector<4xf32> to vector<4x1xf32>
    %185 = vector.broadcast %184 : vector<4x1xf32> to vector<4x8xf32>
    %186 = arith.subf %182, %185 : vector<4x8xf32>
    %187 = math.exp %186 : vector<4x8xf32>
    %cst_76 = arith.constant dense<0.000000e+00> : vector<4xf32>
    %188 = vector.multi_reduction <add>, %187, %cst_76 [1] : vector<4x8xf32> to vector<4xf32>
    %189 = vector.shape_cast %188 : vector<4xf32> to vector<4x1xf32>
    %190 = vector.broadcast %189 : vector<4x1xf32> to vector<4x8xf32>
    %191 = arith.divf %187, %190 : vector<4x8xf32>
    %192 = arith.truncf %191 : vector<4x8xf32> to vector<4x8xbf16>
    %193 = vector.extract_strided_slice %162 {offsets = [0, 0, 0], sizes = [1, 8, 128], strides = [1, 1, 1]} : vector<2x8x128xbf16> to vector<1x8x128xbf16>
    %194 = vector.shape_cast %193 : vector<1x8x128xbf16> to vector<8x128xbf16>
    %cst_77 = arith.constant dense<0.000000e+00> : vector<4x128xf32>
    %195 = tpu.matmul %192, %194, %cst_77 {dimension_numbers = #tpu.dot_dimension_numbers<[1], [0], [0], [1], [0, 0, 1, 1], [], []>} : vector<4x8xbf16>, vector<8x128xbf16>, vector<4x128xf32> -> vector<4x128xf32>
    %196 = vector.extract_strided_slice %161 {offsets = [4, 0], sizes = [4, 64], strides = [1, 1]} : vector<8x64xf32> to vector<4x64xf32>
    %197 = vector.extract_strided_slice %165 {offsets = [8, 0], sizes = [8, 64], strides = [1, 1]} : vector<16x64xf32> to vector<8x64xf32>
    %198 = vector.shape_cast %196 : vector<4x64xf32> to vector<4x1x64xf32>
    %199 = vector.shape_cast %197 : vector<8x64xf32> to vector<1x8x64xf32>
    %200 = vector.broadcast %198 : vector<4x1x64xf32> to vector<4x8x64xf32>
    %201 = vector.broadcast %199 : vector<1x8x64xf32> to vector<4x8x64xf32>
    %202 = arith.addf %200, %201 : vector<4x8x64xf32>
    %c0_78 = arith.constant 0 : index
    %c0_79 = arith.constant 0 : index
    %203 = vector.load %arg9[%c0_78, %c0_79] : memref<1x64xf32, #tpu.memory_space<vmem>>, vector<1x64xf32>
    %204 = vector.shape_cast %203 : vector<1x64xf32> to vector<1x1x64xf32>
    %205 = vector.broadcast %204 : vector<1x1x64xf32> to vector<4x8x64xf32>
    %206 = arith.addf %202, %205 : vector<4x8x64xf32>
    %207 = math.tanh %206 : vector<4x8x64xf32>
    %208 = vector.shape_cast %166 : vector<1x64xf32> to vector<1x1x64xf32>
    %209 = vector.broadcast %208 : vector<1x1x64xf32> to vector<4x8x64xf32>
    %210 = arith.mulf %207, %209 : vector<4x8x64xf32>
    %cst_80 = arith.constant dense<0.000000e+00> : vector<4x8xf32>
    %211 = vector.multi_reduction <add>, %210, %cst_80 [2] : vector<4x8x64xf32> to vector<4x8xf32>
    %cst_81 = arith.constant dense<0xFF800000> : vector<4xf32>
    %212 = vector.multi_reduction <maximumf>, %211, %cst_81 [1] : vector<4x8xf32> to vector<4xf32>
    %213 = vector.shape_cast %212 : vector<4xf32> to vector<4x1xf32>
    %214 = vector.broadcast %213 : vector<4x1xf32> to vector<4x8xf32>
    %215 = arith.subf %211, %214 : vector<4x8xf32>
    %216 = math.exp %215 : vector<4x8xf32>
    %cst_82 = arith.constant dense<0.000000e+00> : vector<4xf32>
    %217 = vector.multi_reduction <add>, %216, %cst_82 [1] : vector<4x8xf32> to vector<4xf32>
    %218 = vector.shape_cast %217 : vector<4xf32> to vector<4x1xf32>
    %219 = vector.broadcast %218 : vector<4x1xf32> to vector<4x8xf32>
    %220 = arith.divf %216, %219 : vector<4x8xf32>
    %221 = arith.truncf %220 : vector<4x8xf32> to vector<4x8xbf16>
    %222 = vector.extract_strided_slice %162 {offsets = [1, 0, 0], sizes = [1, 8, 128], strides = [1, 1, 1]} : vector<2x8x128xbf16> to vector<1x8x128xbf16>
    %223 = vector.shape_cast %222 : vector<1x8x128xbf16> to vector<8x128xbf16>
    %cst_83 = arith.constant dense<0.000000e+00> : vector<4x128xf32>
    %224 = tpu.matmul %221, %223, %cst_83 {dimension_numbers = #tpu.dot_dimension_numbers<[1], [0], [0], [1], [0, 0, 1, 1], [], []>} : vector<4x8xbf16>, vector<8x128xbf16>, vector<4x128xf32> -> vector<4x128xf32>
    %225 = tpu.concatenate %191, %220 in 0 : vector<4x8xf32>, vector<4x8xf32> -> vector<8x8xf32>
    %c0_84 = arith.constant 0 : index
    %c0_85 = arith.constant 0 : index
    %226 = vector.load %arg18[%c0_84, %c0_85] : memref<8x8xf32, #tpu.memory_space<vmem>>, vector<8x8xf32>
    tpu.vector_store %arg18[%c0_84, %c0_85], %225 {strides = array<i32>} : memref<8x8xf32, #tpu.memory_space<vmem>>, vector<8x8xf32>,
    %227 = tpu.concatenate %195, %224 in 0 : vector<4x128xf32>, vector<4x128xf32> -> vector<8x128xf32>
    %c0_86 = arith.constant 0 : index
    %c0_87 = arith.constant 0 : index
    %228 = vector.load %arg11[%c0_86, %c0_87] : memref<128x128xbf16, #tpu.memory_space<vmem>>, vector<128x128xbf16>
    %cst_88 = arith.constant dense<0.000000e+00> : vector<8x128xf32>
    %229 = tpu.matmul %159, %228, %cst_88 {dimension_numbers = #tpu.dot_dimension_numbers<[1], [0], [0], [1], [0, 0, 1, 1], [], []>} : vector<8x128xbf16>, vector<128x128xbf16>, vector<8x128xf32> -> vector<8x128xf32>
    %230 = arith.truncf %227 : vector<8x128xf32> to vector<8x128xbf16>
    %c0_89 = arith.constant 0 : index
    %c0_90 = arith.constant 0 : index
    %231 = vector.load %arg12[%c0_89, %c0_90] : memref<128x128xbf16, #tpu.memory_space<vmem>>, vector<128x128xbf16>
    %cst_91 = arith.constant dense<0.000000e+00> : vector<8x128xf32>
    %232 = tpu.matmul %230, %231, %cst_91 {dimension_numbers = #tpu.dot_dimension_numbers<[1], [0], [0], [1], [0, 0, 1, 1], [], []>} : vector<8x128xbf16>, vector<128x128xbf16>, vector<8x128xf32> -> vector<8x128xf32>
    %233 = arith.addf %229, %232 : vector<8x128xf32>
    %c0_92 = arith.constant 0 : index
    %c0_93 = arith.constant 0 : index
    %234 = vector.load %arg13[%c0_92, %c0_93] : memref<1x128xf32, #tpu.memory_space<vmem>>, vector<1x128xf32>
    %235 = vector.broadcast %234 : vector<1x128xf32> to vector<8x128xf32>
    %236 = arith.addf %233, %235 : vector<8x128xf32>
    %237 = arith.truncf %236 : vector<8x128xf32> to vector<8x128xbf16>
    %cst_94 = arith.constant 0xFF800000 : f32
    %238 = vector.broadcast %cst_94 : f32 to vector<8x1xf32>
    %cst_95 = arith.constant 0.000000e+00 : f32
    %239 = vector.broadcast %cst_95 : f32 to vector<8x1xf32>
    %c0_i32_96 = arith.constant 0 : i32
    %c0_i32_97 = arith.constant 0 : i32
    %c0_i32_98 = arith.constant 0 : i32
    %c0_i32_99 = arith.constant 0 : i32
    %c0_i32_100 = arith.constant 0 : i32
    %240 = tpu.memref_slice %arg15[%c0_i32_96, %c0_i32_99, %c0_i32_100] : memref<2x128x128xbf16, #tpu.memory_space<any>> -> memref<1x128x128xbf16, #tpu.memory_space<any>>
    %241 = tpu.memref_squeeze %240 : memref<1x128x128xbf16, #tpu.memory_space<any>> -> memref<128x128xbf16, #tpu.memory_space<any>>
    %c0_i32_101 = arith.constant 0 : i32
    %c0_i32_102 = arith.constant 0 : i32
    %242 = tpu.memref_slice %arg20[%c0_i32_97, %c0_i32_101, %c0_i32_102] : memref<2x128x128xbf16, #tpu.memory_space<vmem>> -> memref<1x128x128xbf16, #tpu.memory_space<vmem>>
    %243 = tpu.memref_squeeze %242 : memref<1x128x128xbf16, #tpu.memory_space<vmem>> -> memref<128x128xbf16, #tpu.memory_space<vmem>>
    %244 = tpu.memref_slice %arg21[%c0_i32_98] : memref<2x!tpu.dma_semaphore, #tpu.memory_space<semaphore_mem>> -> memref<1x!tpu.dma_semaphore, #tpu.memory_space<semaphore_mem>>
    %245 = tpu.memref_squeeze %244 : memref<1x!tpu.dma_semaphore, #tpu.memory_space<semaphore_mem>> -> memref<!tpu.dma_semaphore, #tpu.memory_space<semaphore_mem>>
    tpu.wait_dma2 semaphore(%245 : memref<!tpu.dma_semaphore, #tpu.memory_space<semaphore_mem>>) src(%241 : memref<128x128xbf16, #tpu.memory_space<any>>) dst(%243 : memref<128x128xbf16, #tpu.memory_space<vmem>>)
    %c0_103 = arith.constant 0 : index
    %c0_104 = arith.constant 0 : index
    %c0_105 = arith.constant 0 : index
    %246 = vector.load %arg20[%c0_103, %c0_104, %c0_105] : memref<2x128x128xbf16, #tpu.memory_space<vmem>>, vector<1x128x128xbf16>
    %247 = vector.shape_cast %246 : vector<1x128x128xbf16> to vector<128x128xbf16>
    %cst_106 = arith.constant dense<0.000000e+00> : vector<8x128xf32>
    %248 = tpu.matmul %237, %247, %cst_106 {dimension_numbers = #tpu.dot_dimension_numbers<[1], [0], [0], [1], [0, 0, 1, 1], [], []>} : vector<8x128xbf16>, vector<128x128xbf16>, vector<8x128xf32> -> vector<8x128xf32>
    %c0_107 = arith.constant 0 : index
    %c0_108 = arith.constant 0 : index
    %c0_109 = arith.constant 0 : index
    %249 = vector.load %arg14[%c0_107, %c0_108, %c0_109] : memref<2x1x128xf32, #tpu.memory_space<vmem>>, vector<1x1x128xf32>
    %250 = vector.shape_cast %249 : vector<1x1x128xf32> to vector<1x128xf32>
    %251 = vector.broadcast %250 : vector<1x128xf32> to vector<8x128xf32>
    %252 = arith.addf %248, %251 : vector<8x128xf32>
    %c0_110 = arith.constant 0 : index
    %c0_111 = arith.constant 0 : index
    %253 = vector.load %arg16[%c0_110, %c0_111] : memref<8x256xf32, #tpu.memory_space<vmem>>, vector<8x128xf32>
    tpu.vector_store %arg16[%c0_110, %c0_111], %252 {strides = array<i32>} : memref<8x256xf32, #tpu.memory_space<vmem>>, vector<8x128xf32>,
    %cst_112 = arith.constant dense<0xFF800000> : vector<8xf32>
    %254 = vector.multi_reduction <maximumf>, %252, %cst_112 [1] : vector<8x128xf32> to vector<8xf32>
    %255 = vector.shape_cast %254 : vector<8xf32> to vector<8x1xf32>
    %256 = arith.maximumf %238, %255 : vector<8x1xf32>
    %257 = arith.subf %238, %256 : vector<8x1xf32>
    %258 = math.exp %257 : vector<8x1xf32>
    %259 = arith.mulf %239, %258 : vector<8x1xf32>
    %260 = vector.broadcast %256 : vector<8x1xf32> to vector<8x128xf32>
    %261 = arith.subf %252, %260 : vector<8x128xf32>
    %262 = math.exp %261 : vector<8x128xf32>
    %cst_113 = arith.constant dense<0.000000e+00> : vector<8xf32>
    %263 = vector.multi_reduction <add>, %262, %cst_113 [1] : vector<8x128xf32> to vector<8xf32>
    %264 = vector.shape_cast %263 : vector<8xf32> to vector<8x1xf32>
    %265 = arith.addf %259, %264 : vector<8x1xf32>
    %c1_i32_114 = arith.constant 1 : i32
    %c1_i32_115 = arith.constant 1 : i32
    %c1_i32_116 = arith.constant 1 : i32
    %c0_i32_117 = arith.constant 0 : i32
    %c0_i32_118 = arith.constant 0 : i32
    %266 = tpu.memref_slice %arg15[%c1_i32_114, %c0_i32_117, %c0_i32_118] : memref<2x128x128xbf16, #tpu.memory_space<any>> -> memref<1x128x128xbf16, #tpu.memory_space<any>>
    %267 = tpu.memref_squeeze %266 : memref<1x128x128xbf16, #tpu.memory_space<any>> -> memref<128x128xbf16, #tpu.memory_space<any>>
    %c0_i32_119 = arith.constant 0 : i32
    %c0_i32_120 = arith.constant 0 : i32
    %268 = tpu.memref_slice %arg20[%c1_i32_115, %c0_i32_119, %c0_i32_120] : memref<2x128x128xbf16, #tpu.memory_space<vmem>> -> memref<1x128x128xbf16, #tpu.memory_space<vmem>>
    %269 = tpu.memref_squeeze %268 : memref<1x128x128xbf16, #tpu.memory_space<vmem>> -> memref<128x128xbf16, #tpu.memory_space<vmem>>
    %270 = tpu.memref_slice %arg21[%c1_i32_116] : memref<2x!tpu.dma_semaphore, #tpu.memory_space<semaphore_mem>> -> memref<1x!tpu.dma_semaphore, #tpu.memory_space<semaphore_mem>>
    %271 = tpu.memref_squeeze %270 : memref<1x!tpu.dma_semaphore, #tpu.memory_space<semaphore_mem>> -> memref<!tpu.dma_semaphore, #tpu.memory_space<semaphore_mem>>
    tpu.wait_dma2 semaphore(%271 : memref<!tpu.dma_semaphore, #tpu.memory_space<semaphore_mem>>) src(%267 : memref<128x128xbf16, #tpu.memory_space<any>>) dst(%269 : memref<128x128xbf16, #tpu.memory_space<vmem>>)
    %c1_121 = arith.constant 1 : index
    %c0_122 = arith.constant 0 : index
    %c0_123 = arith.constant 0 : index
    %272 = vector.load %arg20[%c1_121, %c0_122, %c0_123] : memref<2x128x128xbf16, #tpu.memory_space<vmem>>, vector<1x128x128xbf16>
    %273 = vector.shape_cast %272 : vector<1x128x128xbf16> to vector<128x128xbf16>
    %cst_124 = arith.constant dense<0.000000e+00> : vector<8x128xf32>
    %274 = tpu.matmul %237, %273, %cst_124 {dimension_numbers = #tpu.dot_dimension_numbers<[1], [0], [0], [1], [0, 0, 1, 1], [], []>} : vector<8x128xbf16>, vector<128x128xbf16>, vector<8x128xf32> -> vector<8x128xf32>
    %c1_125 = arith.constant 1 : index
    %c0_126 = arith.constant 0 : index
    %c0_127 = arith.constant 0 : index
    %275 = vector.load %arg14[%c1_125, %c0_126, %c0_127] : memref<2x1x128xf32, #tpu.memory_space<vmem>>, vector<1x1x128xf32>
    %276 = vector.shape_cast %275 : vector<1x1x128xf32> to vector<1x128xf32>
    %277 = vector.broadcast %276 : vector<1x128xf32> to vector<8x128xf32>
    %278 = arith.addf %274, %277 : vector<8x128xf32>
    %c0_128 = arith.constant 0 : index
    %c128 = arith.constant 128 : index
    %279 = vector.load %arg16[%c0_128, %c128] : memref<8x256xf32, #tpu.memory_space<vmem>>, vector<8x128xf32>
    tpu.vector_store %arg16[%c0_128, %c128], %278 {strides = array<i32>} : memref<8x256xf32, #tpu.memory_space<vmem>>, vector<8x128xf32>,
    %cst_129 = arith.constant dense<0xFF800000> : vector<8xf32>
    %280 = vector.multi_reduction <maximumf>, %278, %cst_129 [1] : vector<8x128xf32> to vector<8xf32>
    %281 = vector.shape_cast %280 : vector<8xf32> to vector<8x1xf32>
    %282 = arith.maximumf %256, %281 : vector<8x1xf32>
    %283 = arith.subf %256, %282 : vector<8x1xf32>
    %284 = math.exp %283 : vector<8x1xf32>
    %285 = arith.mulf %265, %284 : vector<8x1xf32>
    %286 = vector.broadcast %282 : vector<8x1xf32> to vector<8x128xf32>
    %287 = arith.subf %278, %286 : vector<8x128xf32>
    %288 = math.exp %287 : vector<8x128xf32>
    %cst_130 = arith.constant dense<0.000000e+00> : vector<8xf32>
    %289 = vector.multi_reduction <add>, %288, %cst_130 [1] : vector<8x128xf32> to vector<8xf32>
    %290 = vector.shape_cast %289 : vector<8xf32> to vector<8x1xf32>
    %291 = arith.addf %285, %290 : vector<8x1xf32>
    %292 = math.log %291 : vector<8x1xf32>
    %293 = arith.addf %282, %292 : vector<8x1xf32>
    %c0_131 = arith.constant 0 : index
    %c0_132 = arith.constant 0 : index
    %294 = vector.load %arg16[%c0_131, %c0_132] : memref<8x256xf32, #tpu.memory_space<vmem>>, vector<8x256xf32>
    %295 = vector.broadcast %293 : vector<8x1xf32> to vector<8x256xf32>
    %296 = arith.subf %294, %295 : vector<8x256xf32>
    %c0_133 = arith.constant 0 : index
    %c0_134 = arith.constant 0 : index
    %297 = vector.load %arg16[%c0_133, %c0_134] : memref<8x256xf32, #tpu.memory_space<vmem>>, vector<8x256xf32>
    tpu.vector_store %arg16[%c0_133, %c0_134], %296 {strides = array<i32>} : memref<8x256xf32, #tpu.memory_space<vmem>>, vector<8x256xf32>,
    return
  }
}

</mosaic_0001>

<bundles_post_ra>
// kernel: attn_decoder_forward.1
= control target key start
LH: loop header
LB: loop body
LE: loop exit
PB: predicated region body
PF: predicated region fallthrough
CT: control target
= control target key end

     0   :  { %s4984_s0 = inlined_call_operand.vmem [shape: bf16[8,128], index: 0, kind: input, shape index: {}]   ;;  %s4985_s1 = inlined_call_operand.vmem [shape: f32[2,128], index: 1, kind: input, shape index: {}]   ;;  %s4986_s2 = inlined_call_operand.vmem [shape: bf16[128,384], index: 2, kind: input, shape index: {}]   ;;  %s4987_s3 = inlined_call_operand.hbm [shape: bf16[128,384], index: 3, kind: input, shape index: {}]   ;;  %s4988_s4 = inlined_call_operand.hbm [shape: f32[1,384], index: 4, kind: input, shape index: {}]   ;;  %s4989_s5 = inlined_call_operand.hbm [shape: f32[1,384], index: 5, kind: input, shape index: {}]   ;;  %s4990_s6 = inlined_call_operand.vmem [shape: bf16[2,8,128], index: 6, kind: input, shape index: {}]   ;;  %s4991_s7 = inlined_call_operand.vmem [shape: bf16[128,64], index: 7, kind: input, shape index: {}]   ;;  %s4992_s8 = inlined_call_operand.vmem [shape: bf16[128,64], index: 8, kind: input, shape index: {}]   ;;  %s4993_s9 = inlined_call_operand.hbm [shape: f32[1,64], index: 9, kind: input, shape index: {}]   ;;  %s4994_s10 = inlined_call_operand.vmem [shape: f32[1,64], index: 10, kind: input, shape index: {}]   ;;  %s4995_s11 = inlined_call_operand.hbm [shape: bf16[128,128], index: 11, kind: input, shape index: {}]   ;;  %s4996_s12 = inlined_call_operand.hbm [shape: bf16[128,128], index: 12, kind: input, shape index: {}]   ;;  %s4997_s13 = inlined_call_operand.hbm [shape: f32[1,128], index: 13, kind: input, shape index: {}]   ;;  %s4998_s14 = inlined_call_operand.hbm [shape: f32[2,1,128], index: 14, kind: input, shape index: {}]   ;;  %s4999_s15 = inlined_call_operand.vmem [shape: bf16[2,128,128], index: 15, kind: input, shape index: {}]   ;;  %s5000_s16 = inlined_call_operand.vmem [shape: f32[8,256], index: 16, kind: output, shape index: {0}]   ;;  %s5001_s17 = inlined_call_operand.hbm [shape: f32[2,128], index: 17, kind: output, shape index: {1}]   ;;  %s5002_s18 = inlined_call_operand.hbm [shape: f32[8,8], index: 18, kind: output, shape index: {2}]  }
   0x1   :  { %5004 = sst [smem:[#allocation33_spill]] %s4984_s0 }
   0x2   :  { %5005 = sst [smem:[#allocation34_spill]] %s4985_s1 }
   0x3   :  { %5006 = sst [smem:[#allocation35_spill]] %s4986_s2 }
   0x4   :  { %24 = vsyncpa [#allocation6], 0 }
   0x5   :  { %25 = vsyncpa [#allocation9], 0 }
   0x6   :  { %26 = vsyncpa [#allocation12], 0 }
   0x7   :  { %27 = vsyncpa [#allocation15], 0 }
   0x8   :  { %28 = vsyncpa [#allocation18], 0 }
   0x9   :  { %29 = vsyncpa [#allocation7], 0 }
   0xa   :  { %30 = vsyncpa [#allocation21], 0  ;;  %s4041_s27 = smov [#allocation8]   ;;  %s4042_s29 = smov [#allocation11]  }
   0xb   :  { %s55_s28 = sshll.u32 %s4041_s27, 4  ;;  %s81_s30 = sshll.u32 %s4042_s29, 4  ;;  %s56_s28 = int_to_ptr.vmem [resolvable:$true] %s55_s28  ;;  %s82_s30 = int_to_ptr.vmem [resolvable:$true] %s81_s30 }
   0xc   :  { %s3803_s1 = scalar_lea.hbm %s4988_s4, 48 }
   0xd   :  { %p3804_p0 = scmp.ne.s32.totalorder %s4988_s4, %s3803_s1  ;;  %p3807_p1 = scmp.lt.u32.totalorder %s3803_s1, %s4988_s4 }
   0xf   :  { %p3809_p2 = pnand %p3807_p1, %p3804_p0 }
  0x11   :  { %3812 = shalt.err (!%p3809_p2)
}
  0x12   :  { %s3813_s23 = scalar_lea.vmem %s56_s28, 48  ;;  %s3817_s24 = scalar_lea.vmem %s56_s28, 64 }
  0x13   :  { %p3814_p3 = scmp.ne.s32.totalorder %s56_s28, %s3813_s23  ;;  %p3818_p4 = scmp.lt.s32.totalorder %s56_s28, %s56_s28 }
  0x14   :  { %p3819_p5 = scmp.lt.s32.totalorder %s3817_s24, %s3813_s23 }
  0x16   :  { %p3820_p6 = por %p3819_p5, %p3818_p4 }
  0x18   :  { %p3821_p7 = pnand %p3820_p6, %p3814_p3 }
  0x1a   :  { %3824 = shalt.err (!%p3821_p7)
}
  0x1b   :  { %58 = dma.hbm_to_vmem [thread:$0]  %s4988_s4, 48, %s56_s28, [#allocation9]  }
  0x1c   :  { %s3825_s0 = scalar_lea.hbm %s4993_s9, 16 }
  0x1d   :  { %p3826_p8 = scmp.ne.s32.totalorder %s4993_s9, %s3825_s0  ;;  %p3829_p9 = scmp.lt.u32.totalorder %s3825_s0, %s4993_s9 }
  0x1f   :  { %p3831_p10 = pnand %p3829_p9, %p3826_p8 }
  0x21   :  { %3834 = shalt.err (!%p3831_p10)
}
  0x22   :  { %s3835_s22 = scalar_lea.vmem %s82_s30, 16  ;;  %s3839_s2 = scalar_lea.vmem %s82_s30, 32 }
  0x23   :  { %p3836_p11 = scmp.ne.s32.totalorder %s82_s30, %s3835_s22  ;;  %p3840_p12 = scmp.lt.s32.totalorder %s82_s30, %s82_s30 }
  0x24   :  { %p3841_p13 = scmp.lt.s32.totalorder %s3839_s2, %s3835_s22 }
  0x26   :  { %p3842_p0 = por %p3841_p13, %p3840_p12 }
  0x28   :  { %p3843_p1 = pnand %p3842_p0, %p3836_p11 }
  0x2a   :  { %3846 = shalt.err (!%p3843_p1)
}
  0x2b   :  { %84 = dma.hbm_to_vmem [thread:$0]  %s4993_s9, 16, %s82_s30, [#allocation12]  }
  0x2c   :  { %s4043_s23 = smov [#allocation14]   ;;  %s4044_s25 = smov [#allocation5]  }
  0x2d   :  { %s104_s24 = sshll.u32 %s4043_s23, 4  ;;  %s42_s26 = sshll.u32 %s4044_s25, 4  ;;  %s105_s24 = int_to_ptr.vmem [resolvable:$true] %s104_s24  ;;  %s4180_s26 = int_to_ptr.vmem [resolvable:$true] %s42_s26 }
  0x2e   :  { %s3847_s0 = scalar_lea.hbm %s4996_s12, 1024 }
  0x2f   :  { %p3848_p2 = scmp.ne.s32.totalorder %s4996_s12, %s3847_s0  ;;  %p3851_p3 = scmp.lt.u32.totalorder %s3847_s0, %s4996_s12 }
  0x31   :  { %p3853_p4 = pnand %p3851_p3, %p3848_p2 }
  0x33   :  { %3856 = shalt.err (!%p3853_p4)
}
  0x34   :  { %s3857_s9 = scalar_lea.vmem %s105_s24, 1024  ;;  %p3862_p6 = scmp.lt.s32.totalorder %s105_s24, %s105_s24 }
  0x35   :  { %p3858_p5 = scmp.ne.s32.totalorder %s105_s24, %s3857_s9  ;;  %p3863_p7 = scmp.lt.s32.totalorder %s3857_s9, %s3857_s9 }
  0x37   :  { %p3864_p8 = por %p3863_p7, %p3862_p6 }
  0x39   :  { %p3865_p9 = pnand %p3864_p8, %p3858_p5 }
  0x3b   :  { %3868 = shalt.err (!%p3865_p9)
}
  0x3c   :  { %s4045_s30 = smov 64   ;;  %s4046_s22 = smov 4  }
  0x3d   :  { %110 = dma.hbm_to_vmem [thread:$0]  %s4996_s12, 1024, %s105_s24, [#allocation15], %s4045_s30, %s4045_s30, %s4046_s22  }
  0x3e   :  { %s3869_s25 = scalar_lea.hbm %s4987_s3, 3072 }
  0x3f   :  { %p3870_p10 = scmp.ne.s32.totalorder %s4987_s3, %s3869_s25  ;;  %p3873_p11 = scmp.lt.u32.totalorder %s3869_s25, %s4987_s3 }
  0x41   :  { %p3875_p12 = pnand %p3873_p11, %p3870_p10 }
  0x43   :  { %3878 = shalt.err (!%p3875_p12)
}
  0x44   :  { %s3879_s1 = scalar_lea.vmem %s4180_s26, 3072  ;;  %p3884_p0 = scmp.lt.s32.totalorder %s4180_s26, %s4180_s26 }
  0x45   :  { %p3880_p13 = scmp.ne.s32.totalorder %s4180_s26, %s3879_s1  ;;  %p3885_p1 = scmp.lt.s32.totalorder %s3879_s1, %s3879_s1 }
  0x47   :  { %p3886_p2 = por %p3885_p1, %p3884_p0 }
  0x49   :  { %p3887_p3 = pnand %p3886_p2, %p3880_p13 }
  0x4b   :  { %3890 = shalt.err (!%p3887_p3)
}
  0x4c   :  { %s4047_s12 = smov 192   ;;  %s4048_s24 = smov 12  }
  0x4d   :  { %48 = dma.hbm_to_vmem [thread:$0]  %s4987_s3, 3072, %s4180_s26, [#allocation6], %s4047_s12, %s4047_s12, %s4048_s24  }
  0x4e   :  { %s4049_s9 = smov [#allocation10]   ;;  %s4050_s4 = smov [#allocation13]  }
  0x4f   :  { %s65_s2 = sshll.u32 %s4049_s9, 4  ;;  %s92_s28 = sshll.u32 %s4050_s4, 4  ;;  %s66_s2 = int_to_ptr.vmem [resolvable:$true] %s65_s2  ;;  %s4214_s28 = int_to_ptr.vmem [resolvable:$true] %s92_s28 }
  0x50   :  { %s3891_s27 = scalar_lea.hbm %s4989_s5, 48 }
  0x51   :  { %p3892_p4 = scmp.ne.s32.totalorder %s4989_s5, %s3891_s27  ;;  %p3895_p5 = scmp.lt.u32.totalorder %s3891_s27, %s4989_s5 }
  0x53   :  { %p3897_p6 = pnand %p3895_p5, %p3892_p4 }
  0x55   :  { %3900 = shalt.err (!%p3897_p6)
}
  0x56   :  { %s3901_s3 = scalar_lea.vmem %s66_s2, 48  ;;  %s3905_s26 = scalar_lea.vmem %s66_s2, 64 }
  0x57   :  { %p3902_p7 = scmp.ne.s32.totalorder %s66_s2, %s3901_s3  ;;  %p3906_p8 = scmp.lt.s32.totalorder %s66_s2, %s66_s2 }
  0x58   :  { %p3907_p9 = scmp.lt.s32.totalorder %s3905_s26, %s3901_s3 }
  0x5a   :  { %p3908_p10 = por %p3907_p9, %p3906_p8 }
  0x5c   :  { %p3909_p11 = pnand %p3908_p10, %p3902_p7 }
  0x5e   :  { %3912 = shalt.err (!%p3909_p11)
}
  0x5f   :  { %68 = dma.hbm_to_vmem [thread:$0]  %s4989_s5, 48, %s66_s2, [#allocation9]  }
  0x60   :  { %s3913_s9 = scalar_lea.hbm %s4995_s11, 1024 }
  0x61   :  { %p3914_p12 = scmp.ne.s32.totalorder %s4995_s11, %s3913_s9  ;;  %p3917_p13 = scmp.lt.u32.totalorder %s3913_s9, %s4995_s11 }
  0x63   :  { %p3919_p0 = pnand %p3917_p13, %p3914_p12 }
  0x65   :  { %3922 = shalt.err (!%p3919_p0)
}
  0x66   :  { %s3923_s29 = scalar_lea.vmem %s4214_s28, 1024  ;;  %p3928_p2 = scmp.lt.s32.totalorder %s4214_s28, %s4214_s28 }
  0x67   :  { %p3924_p1 = scmp.ne.s32.totalorder %s4214_s28, %s3923_s29  ;;  %p3929_p3 = scmp.lt.s32.totalorder %s3923_s29, %s3923_s29 }
  0x69   :  { %p3930_p4 = por %p3929_p3, %p3928_p2 }
  0x6b   :  { %p3931_p5 = pnand %p3930_p4, %p3924_p1 }
  0x6d   :  { %3934 = shalt.err (!%p3931_p5)
}
  0x6e   :  { %98 = dma.hbm_to_vmem [thread:$0]  %s4995_s11, 1024, %s4214_s28, [#allocation12], %s4045_s30, %s4045_s30, %s4046_s22  }
  0x6f   :  { %s4051_s0 = smov [#allocation16]   ;;  %s4052_s1 = smov [#allocation17]  }
  0x70   :  { %s117_s19 = sshll.u32 %s4051_s0, 4  ;;  %s126_s3 = sshll.u32 %s4052_s1, 4  ;;  %s118_s19 = int_to_ptr.vmem [resolvable:$true] %s117_s19  ;;  %s4248_s3 = int_to_ptr.vmem [resolvable:$true] %s126_s3 }
  0x71   :  { %s3935_s24 = scalar_lea.hbm %s4997_s13, 16 }
  0x72   :  { %p3936_p6 = scmp.ne.s32.totalorder %s4997_s13, %s3935_s24  ;;  %p3939_p7 = scmp.lt.u32.totalorder %s3935_s24, %s4997_s13 }
  0x74   :  { %p3941_p8 = pnand %p3939_p7, %p3936_p6 }
  0x76   :  { %3944 = shalt.err (!%p3941_p8)
}
  0x77   :  { %s3945_s11 = scalar_lea.vmem %s118_s19, 16  ;;  %s3949_s30 = scalar_lea.vmem %s118_s19, 32 }
  0x78   :  { %p3946_p9 = scmp.ne.s32.totalorder %s118_s19, %s3945_s11  ;;  %p3950_p10 = scmp.lt.s32.totalorder %s118_s19, %s118_s19 }
  0x79   :  { %p3951_p11 = scmp.lt.s32.totalorder %s3949_s30, %s3945_s11 }
  0x7b   :  { %p3952_p12 = por %p3951_p11, %p3950_p10 }
  0x7d   :  { %p3953_p13 = pnand %p3952_p12, %p3946_p9 }
  0x7f   :  { %3956 = shalt.err (!%p3953_p13)
}
  0x80   :  { %120 = dma.hbm_to_vmem [thread:$0]  %s4997_s13, 16, %s118_s19, [#allocation15]  }
  0x81   :  { %s3957_s27 = scalar_lea.hbm %s4998_s14, 32 }
  0x82   :  { %p3958_p0 = scmp.ne.s32.totalorder %s4998_s14, %s3957_s27  ;;  %p3961_p1 = scmp.lt.u32.totalorder %s3957_s27, %s4998_s14 }
  0x84   :  { %p3963_p2 = pnand %p3961_p1, %p3958_p0 }
  0x86   :  { %3966 = shalt.err (!%p3963_p2)
}
  0x87   :  { %s3967_s1 = scalar_lea.vmem %s4248_s3, 32  ;;  %p3972_p4 = scmp.lt.s32.totalorder %s4248_s3, %s4248_s3 }
  0x88   :  { %p3968_p3 = scmp.ne.s32.totalorder %s4248_s3, %s3967_s1  ;;  %p3973_p5 = scmp.lt.s32.totalorder %s3967_s1, %s3967_s1 }
  0x8a   :  { %p3974_p6 = por %p3973_p5, %p3972_p4 }
  0x8c   :  { %p3975_p7 = pnand %p3974_p6, %p3968_p3 }
  0x8e   :  { %3978 = shalt.err (!%p3975_p7)
}
  0x8f   :  { %s4053_s13 = smov 16   ;;  %s4054_s19 = smov 1  }
  0x90   :  { %132 = dma.hbm_to_vmem [thread:$0]  %s4998_s14, 32, %s4248_s3, [#allocation18], %s4053_s13, %s4053_s13, %s4054_s19  }
  0x91   :  { %4023 = dma.done.wait [#allocation6], 3072  }
  0x92   :  { %4024 = vsyncadd [#allocation6], 4294964224 }
  0x93   :  { %4025 = dma.done.wait [#allocation9], 96  }
  0x94   :  { %4026 = vsyncadd [#allocation9], 4294967200 }
  0x95   :  { %4027 = dma.done.wait [#allocation12], 1040  }
  0x96   :  { %4028 = vsyncadd [#allocation12], 4294966256 }
  0x97   :  { %4029 = dma.done.wait [#allocation15], 1040  }
  0x98   :  { %4030 = vsyncadd [#allocation15], 4294966256 }
  0x99   :  { %4031 = dma.done.wait [#allocation18], 32  }
  0x9a   :  { %4032 = vsyncadd [#allocation18], 4294967264  ;;  %v4282_v0 = vld [vmem:[%s4999_s15] sm:$0xff]  ;;  %v4287_v1 = vld [vmem:[%s4999_s15 + $0x8] sm:$0xff] }
  0x9b   :  { %v4292_v2 = vld [vmem:[%s4999_s15 + $0x10] sm:$0xff]  ;;  %v4297_v3 = vld [vmem:[%s4999_s15 + $0x18] sm:$0xff]  ;;  %v4302_v4 = vld [vmem:[%s4999_s15 + $0x20] sm:$0xff] }
  0x9c   :  { %v4307_v5 = vld [vmem:[%s4999_s15 + $0x28] sm:$0xff]  ;;  %v4312_v6 = vld [vmem:[%s4999_s15 + $0x30] sm:$0xff]  ;;  %v4317_v7 = vld [vmem:[%s4999_s15 + $0x38] sm:$0xff] }
  0x9d   :  { %213 = vsyncadd [#allocation4], 1024  ;;  %v4322_v8 = vld [vmem:[%s4999_s15 + $0x40] sm:$0xff]  ;;  %v4327_v9 = vld [vmem:[%s4999_s15 + $0x48] sm:$0xff] }
  0x9e   :  { %v4332_v10 = vld [vmem:[%s4999_s15 + $0x50] sm:$0xff]  ;;  %v4337_v11 = vld [vmem:[%s4999_s15 + $0x58] sm:$0xff]  ;;  %v4342_v12 = vld [vmem:[%s4999_s15 + $0x60] sm:$0xff] }
  0x9f   :  { %v4347_v13 = vld [vmem:[%s4999_s15 + $0x68] sm:$0xff]  ;;  %v4352_v14 = vld [vmem:[%s4999_s15 + $0x70] sm:$0xff]  ;;  %v4357_v15 = vld [vmem:[%s4999_s15 + $0x78] sm:$0xff] }
  0xa0   :  { %272 = vsyncadd [#allocation4 + $0x1], 1024  ;;  %s5007_s23 = sld [smem:[#allocation35_spill]]  ;;  %v4055_v18 = vmov 0.0   ;;  %v4056_v19 = vmov 0   ;;  %vm4057_vm0 = vmmov 0  }
  0xa1   :  { %3330 = vmatprep.subr.bf16.mxu1 %v4055_v18  ;;  %483 = vmatprep.mubr.bf16.mxu0 %v4056_v19  ;;  %v4435_v40 = vld [vmem:[#allocation5 + $0x4] ss:$12 sps:$4 sm:$0xff]   ;;  %s5008_s22 = sld [smem:[#allocation33_spill]]  ;;  %v4441_v42 = vld [vmem:[#allocation5] ss:$12 sps:$4 sm:$0xff]   ;;  %s5009_s15 = sld [smem:[#allocation34_spill]] }
  0xa2   :  { %3346 = vmatprep.mubr.msk.bf16.mxu1 %vm4057_vm0, %v4055_v18  ;;  %3582 = vset.pattern.permute.xlu0 %v4056_v19  ;;  %v4447_v44 = vld [vmem:[#allocation5 + $0x1c] ss:$12 sps:$4 sm:$0xff]   ;;  %v4450_v45 = vld [vmem:[#allocation5 + $0x18] ss:$12 sps:$4 sm:$0xff]   ;;  %v4457_v47 = vld [vmem:[#allocation5 + $0x34] ss:$12 sps:$4 sm:$0xff]  }
  0xa3   :  { %3583 = vset.pattern.permute.xlu1 %v4056_v19  ;;  %v4460_v48 = vld [vmem:[#allocation5 + $0x30] ss:$12 sps:$4 sm:$0xff]   ;;  %v3637_v49 = vld [vmem:[#allocation5 + $0x8] ss:$12 sps:$4 sm:$0xff]   ;;  %v4463_v50 = vld [vmem:[#allocation5 + $0x4c] ss:$12 sps:$4 sm:$0xff]  }
  0xa4   :  { %v4468_v51 = vld [vmem:[#allocation5 + $0x48] ss:$12 sps:$4 sm:$0xff]   ;;  %v3641_v52 = vld [vmem:[#allocation5 + $0x20] ss:$12 sps:$4 sm:$0xff]   ;;  %v4470_v53 = vld [vmem:[#allocation5 + $0x64] ss:$12 sps:$4 sm:$0xff]  }
  0xa5   :  { %v4475_v54 = vld [vmem:[#allocation5 + $0x60] ss:$12 sps:$4 sm:$0xff]   ;;  %v3642_v55 = vld [vmem:[#allocation5 + $0x38] ss:$12 sps:$4 sm:$0xff]   ;;  %v4479_v56 = vld [vmem:[#allocation5 + $0x7c] ss:$12 sps:$4 sm:$0xff]  }
  0xa6   :  { %v3584_v16 = vld [vmem:[%s5007_s23 + $0x4] ss:$12 sps:$4 sm:$0xff]   ;;  %v3586_v17 = vld [vmem:[%s5007_s23] ss:$12 sps:$4 sm:$0xff]   ;;  %v3587_v20 = vld [vmem:[%s5007_s23 + $0x1c] ss:$12 sps:$4 sm:$0xff]  }
  0xa7   :  { %451 = vmatprep.subr.bf16.mxu0 %v3584_v16  ;;  %v3589_v21 = vld [vmem:[%s5007_s23 + $0x18] ss:$12 sps:$4 sm:$0xff]   ;;  %v3590_v22 = vld [vmem:[%s5007_s23 + $0x34] ss:$12 sps:$4 sm:$0xff]   ;;  %v3592_v23 = vld [vmem:[%s5007_s23 + $0x30] ss:$12 sps:$4 sm:$0xff]  }
  0xa8   :  { %452 = vmatpush1.bf16.msra.mxu0 %v3586_v17  ;;  %v3593_v24 = vld [vmem:[%s5007_s23 + $0x4c] ss:$12 sps:$4 sm:$0xff]   ;;  %v3605_v25 = vld [vmem:[%s5007_s23 + $0x8] ss:$12 sps:$4 sm:$0xff]   ;;  %v3596_v28 = vld [vmem:[%s5007_s23 + $0x64] ss:$12 sps:$4 sm:$0xff]  }
  0xa9   :  { %453 = vmatprep.subr.bf16.mxu0 %v3587_v20  ;;  %v3595_v26 = vld [vmem:[%s5007_s23 + $0x48] ss:$12 sps:$4 sm:$0xff]   ;;  %3331 = vmatpush3.bf16.msra.mxu1 %v3605_v25  ;;  %v3609_v27 = vld [vmem:[%s5007_s23 + $0x20] ss:$12 sps:$4 sm:$0xff]   ;;  %v3613_v30 = vld [vmem:[%s5007_s23 + $0x38] ss:$12 sps:$4 sm:$0xff]  }
  0xaa   :  { %3332 = vmatprep.subr.bf16.mxu1 %v4055_v18  ;;  %v3598_v29 = vld [vmem:[%s5007_s23 + $0x60] ss:$12 sps:$4 sm:$0xff]   ;;  %v3599_v31 = vld [vmem:[%s5007_s23 + $0x7c] ss:$12 sps:$4 sm:$0xff]   ;;  %v3601_v32 = vld [vmem:[%s5007_s23 + $0x78] ss:$12 sps:$4 sm:$0xff]  }
  0xab   :  { %v3617_v33 = vld [vmem:[%s5007_s23 + $0x50] ss:$12 sps:$4 sm:$0xff]   ;;  %v3602_v34 = vld [vmem:[%s5007_s23 + $0x94] ss:$12 sps:$4 sm:$0xff]   ;;  %v3606_v37 = vld [vmem:[%s5007_s23 + $0xac] ss:$12 sps:$4 sm:$0xff]  }
  0xac   :  { %454 = vmatpush1.bf16.msra.mxu0 %v3589_v21  ;;  %v3604_v35 = vld [vmem:[%s5007_s23 + $0x90] ss:$12 sps:$4 sm:$0xff]   ;;  %v3621_v36 = vld [vmem:[%s5007_s23 + $0x68] ss:$12 sps:$4 sm:$0xff]   ;;  %v3625_v39 = vld [vmem:[%s5007_s23 + $0x80] ss:$12 sps:$4 sm:$0xff]  }
  0xad   :  { %455 = vmatprep.subr.bf16.mxu0 %v3590_v22  ;;  %3333 = vmatpush3.bf16.msra.mxu1 %v3609_v27  ;;  %v3608_v38 = vld [vmem:[%s5007_s23 + $0xa8] ss:$12 sps:$4 sm:$0xff]   ;;  %v273_v41 = vld [vmem:[%s5008_s22] sm:$0xf]  ;;  %v3629_v43 = vld [vmem:[%s5007_s23 + $0x98] ss:$12 sps:$4 sm:$0xff]  }
  0xae   :  { %3334 = vmatprep.subr.bf16.mxu1 %v4055_v18  ;;  %v3633_v46 = vld [vmem:[%s5007_s23 + $0xb0] ss:$12 sps:$4 sm:$0xff]   ;;  %v4484_v57 = vld [vmem:[#allocation5 + $0x78] ss:$12 sps:$4 sm:$0xff]   ;;  %v3643_v58 = vld [vmem:[#allocation5 + $0x50] ss:$12 sps:$4 sm:$0xff]  }
  0xaf   :  { %v4486_v59 = vld [vmem:[#allocation5 + $0x94] ss:$12 sps:$4 sm:$0xff]   ;;  %v4491_v60 = vld [vmem:[#allocation5 + $0x90] ss:$12 sps:$4 sm:$0xff]   ;;  %v4493_v62 = vld [vmem:[#allocation5 + $0xac] ss:$12 sps:$4 sm:$0xff]  }
  0xb0   :  { %456 = vmatpush1.bf16.msra.mxu0 %v3592_v23  ;;  %v3644_v61 = vld [vmem:[#allocation5 + $0x68] ss:$12 sps:$4 sm:$0xff]   ;;  %v4503_v16 = vld [vmem:[%s5009_s15] sm:$0x3]  ;;  %v3645_v17 = vld [vmem:[#allocation5 + $0x80] ss:$12 sps:$4 sm:$0xff]  }
  0xb1   :  { %457 = vmatprep.subr.bf16.mxu0 %v3593_v24  ;;  %3335 = vmatpush3.bf16.msra.mxu1 %v3613_v30  ;;  %v4498_v63 = vld [vmem:[#allocation5 + $0xa8] ss:$12 sps:$4 sm:$0xff]   ;;  %v3646_v20 = vld [vmem:[#allocation5 + $0x98] ss:$12 sps:$4 sm:$0xff]   ;;  %v533_v21 = vpack.c.bf16 %v4503_v16, %v4503_v16  ;;  %v3647_v22 = vld [vmem:[#allocation5 + $0xb0] ss:$12 sps:$4 sm:$0xff]  }
  0xb2   :  { %3336 = vmatprep.subr.bf16.mxu1 %v4055_v18  ;;  %v3648_v23 = vld [vmem:[#allocation5 + $0x8] ss:$12 sps:$4 sm:$0xff]   ;;  %v3649_v24 = vld [vmem:[#allocation5 + $0x20] ss:$12 sps:$4 sm:$0xff]   ;;  %v3650_v25 = vld [vmem:[#allocation5 + $0x38] ss:$12 sps:$4 sm:$0xff]  }
  0xb3   :  { %v3652_v27 = vld [vmem:[#allocation5 + $0x68] ss:$12 sps:$4 sm:$0xff]   ;;  %v3655_v30 = vld [vmem:[#allocation5 + $0xb0] ss:$12 sps:$4 sm:$0xff]   ;;  %vm1706_vm1 = vcmask 1043456   ;;  %vm2001_vm2 = vcmask 523264  }
  0xb4   :  { %458 = vmatpush1.bf16.msra.mxu0 %v3595_v26  ;;  %v3651_v26 = vld [vmem:[#allocation5 + $0x50] ss:$12 sps:$4 sm:$0xff]   ;;  %vm2038_vm3 = vcmask 1042434   ;;  %vm2036_vm4 = vcmask 1041409   ;;  %vm2040_vm5 = vcmask 1043459   ;;  %vm2043_vm6 = vcmask 60416  }
  0xb5   :  { %459 = vmatprep.subr.bf16.mxu0 %v3596_v28  ;;  %3337 = vmatpush3.bf16.msra.mxu1 %v3617_v33  ;;  %v3653_v28 = vld [vmem:[#allocation5 + $0x80] ss:$12 sps:$4 sm:$0xff]   ;;  %vm2192_vm7 = vcmask 64512   ;;  %vm2598_vm8 = vcmask 1045509   ;;  %vm2600_vm9 = vcmask 1046534   ;;  %vm2602_vm10 = vcmask 1047559  }
  0xb6   :  { %3338 = vmatprep.subr.bf16.mxu1 %v4055_v18 }
  0xb8   :  { %460 = vmatpush1.bf16.msra.mxu0 %v3598_v29  ;;  %v3654_v29 = vld [vmem:[#allocation5 + $0x98] ss:$12 sps:$4 sm:$0xff]  }
  0xb9   :  { %461 = vmatprep.subr.bf16.mxu0 %v3599_v31  ;;  %3339 = vmatpush3.bf16.msra.mxu1 %v3621_v36 }
  0xba   :  { %3340 = vmatprep.subr.bf16.mxu1 %v4055_v18 }
  0xbc   :  { %462 = vmatpush1.bf16.msra.mxu0 %v3601_v32 }
  0xbd   :  { %463 = vmatprep.subr.bf16.mxu0 %v3602_v34  ;;  %3341 = vmatpush3.bf16.msra.mxu1 %v3625_v39  ;;  %v308_v39 = vlaneseq }
  0xbe   :  { %3342 = vmatprep.subr.bf16.mxu1 %v4055_v18 }
  0xc0   :  { %464 = vmatpush1.bf16.msra.mxu0 %v3604_v35 }
  0xc1   :  { %465 = vmatprep.subr.bf16.mxu0 %v3606_v37  ;;  %3343 = vmatpush3.bf16.msra.mxu1 %v3629_v43 }
  0xc2   :  { %3344 = vmatprep.subr.bf16.mxu1 %v4055_v18 }
  0xc4   :  { %466 = vmatpush1.bf16.msra.mxu0 %v3608_v38 }
  0xc5   :  { %711 = vmatprep.subr.bf16.mxu0 %v4435_v40  ;;  %3345 = vmatpush3.bf16.msra.mxu1 %v3633_v46  ;;  %v306_v46 = vld [vmem:[#allocation8] sm:$0x7] }
  0xc6   :  { %3350 = vmatprep.subr.bf16.mxu1 %v4055_v18 }
  0xc7   :  { %484 = vmatmul.mubr.bf16.vlgmr.msra.gmra.mrb[0].mxu0 %v273_v41 }
  0xc8   :  { %712 = vmatpush1.bf16.msra.mxu0 %v4441_v42  ;;  %743 = vmatprep.mubr.bf16.mxu0 %v4056_v19 }
  0xc9   :  { %713 = vmatprep.subr.bf16.mxu0 %v4447_v44  ;;  %3347 = vmatmul.mubr.bf16.vlgmr.msra.gmra.mrb[0].mxu1 %v273_v41  ;;  %v4543_v41 = vshrl.u32 %v308_v39, 7 }
  0xca   :  { %3351 = vmatpush3.bf16.msra.mxu1 %v3637_v49  ;;  %3366 = vmatprep.mubr.msk.bf16.mxu1 %vm4057_vm0, %v4055_v18  ;;  %v566_v49 = vld [vmem:[#allocation10] sm:$0x7] }
  0xcb   :  { %3352 = vmatprep.subr.bf16.mxu1 %v4055_v18  ;;  %v4546_v43 = vsub.s32 0, %v4543_v41 }
  0xcc   :  { %714 = vmatpush1.bf16.msra.mxu0 %v4450_v45 }
  0xcd   :  { %715 = vmatprep.subr.bf16.mxu0 %v4457_v47 }
  0xce   :  { %3353 = vmatpush3.bf16.msra.mxu1 %v3641_v52  ;;  %v4549_v52 = vsub.s32 1, %v4543_v41 }
  0xcf   :  { %3354 = vmatprep.subr.bf16.mxu1 %v4055_v18 }
  0xd0   :  { %716 = vmatpush1.bf16.msra.mxu0 %v4460_v48 }
  0xd1   :  { %717 = vmatprep.subr.bf16.mxu0 %v4463_v50 }
  0xd2   :  { %3355 = vmatpush3.bf16.msra.mxu1 %v3642_v55  ;;  %v311_v55 = vrot.slane %v306_v46, %v4546_v43 }
  0xd3   :  { %3356 = vmatprep.subr.bf16.mxu1 %v4055_v18 }
  0xd4   :  { %718 = vmatpush1.bf16.msra.mxu0 %v4468_v51 }
  0xd5   :  { %719 = vmatprep.subr.bf16.mxu0 %v4470_v53 }
  0xd6   :  { %3357 = vmatpush3.bf16.msra.mxu1 %v3643_v58  ;;  %v571_v58 = vrot.slane %v566_v49, %v4546_v43 }
  0xd7   :  { %3358 = vmatprep.subr.bf16.mxu1 %v4055_v18 }
  0xd8   :  { %720 = vmatpush1.bf16.msra.mxu0 %v4475_v54 }
  0xd9   :  { %721 = vmatprep.subr.bf16.mxu0 %v4479_v56 }
  0xda   :  { %3359 = vmatpush3.bf16.msra.mxu1 %v3644_v61  ;;  %v575_v61 = vrot.slane %v566_v49, %v4549_v52 }
  0xdb   :  { %3360 = vmatprep.subr.bf16.mxu1 %v4055_v18 }
  0xdc   :  { %722 = vmatpush1.bf16.msra.mxu0 %v4484_v57 }
  0xdd   :  { %723 = vmatprep.subr.bf16.mxu0 %v4486_v59 }
  0xde   :  { %3361 = vmatpush3.bf16.msra.mxu1 %v3645_v17  ;;  %v315_v17 = vrot.slane %v306_v46, %v4549_v52 }
  0xdf   :  { %3362 = vmatprep.subr.bf16.mxu1 %v4055_v18 }
  0xe0   :  { %724 = vmatpush1.bf16.msra.mxu0 %v4491_v60 }
  0xe1   :  { %725 = vmatprep.subr.bf16.mxu0 %v4493_v62 }
  0xe2   :  { %3363 = vmatpush3.bf16.msra.mxu1 %v3646_v20 }
  0xe3   :  { %3364 = vmatprep.subr.bf16.mxu1 %v4055_v18 }
  0xe4   :  { %726 = vmatpush1.bf16.msra.mxu0 %v4498_v63 }
  0xe5   :  { %992 = vmatprep.subr.bf16.mxu0 %v4435_v40 }
  0xe6   :  { %3365 = vmatpush3.bf16.msra.mxu1 %v3647_v22 }
  0xe7   :  { %744 = vmatmul.mubr.bf16.vlgmr.msra.gmra.mrb[4].mxu0 %v533_v21  ;;  %3370 = vmatprep.subr.bf16.mxu1 %v4055_v18 }
  0xe8   :  { %993 = vmatpush1.bf16.msra.mxu0 %v4441_v42  ;;  %1024 = vmatprep.mubr.bf16.mxu0 %v4056_v19 }
  0xe9   :  { %994 = vmatprep.subr.bf16.mxu0 %v4447_v44  ;;  %3367 = vmatmul.mubr.bf16.vlgmr.msra.gmra.mrb[4].mxu1 %v533_v21 }
  0xea   :  { %3386 = vmatprep.mubr.msk.bf16.mxu1 %vm4057_vm0, %v4055_v18  ;;  %3371 = vmatpush3.bf16.msra.mxu1 %v3648_v23 }
  0xeb   :  { %3372 = vmatprep.subr.bf16.mxu1 %v4055_v18 }
  0xec   :  { %995 = vmatpush1.bf16.msra.mxu0 %v4450_v45 }
  0xed   :  { %996 = vmatprep.subr.bf16.mxu0 %v4457_v47 }
  0xee   :  { %3373 = vmatpush3.bf16.msra.mxu1 %v3649_v24 }
  0xef   :  { %3374 = vmatprep.subr.bf16.mxu1 %v4055_v18 }
  0xf0   :  { %997 = vmatpush1.bf16.msra.mxu0 %v4460_v48 }
  0xf1   :  { %998 = vmatprep.subr.bf16.mxu0 %v4463_v50 }
  0xf2   :  { %3375 = vmatpush3.bf16.msra.mxu1 %v3650_v25 }
  0xf3   :  { %3376 = vmatprep.subr.bf16.mxu1 %v4055_v18 }
  0xf4   :  { %999 = vmatpush1.bf16.msra.mxu0 %v4468_v51 }
  0xf5   :  { %1000 = vmatprep.subr.bf16.mxu0 %v4470_v53 }
  0xf6   :  { %3377 = vmatpush3.bf16.msra.mxu1 %v3651_v26 }
  0xf7   :  { %3378 = vmatprep.subr.bf16.mxu1 %v4055_v18 }
  0xf8   :  { %1001 = vmatpush1.bf16.msra.mxu0 %v4475_v54 }
  0xf9   :  { %1002 = vmatprep.subr.bf16.mxu0 %v4479_v56 }
  0xfa   :  { %3379 = vmatpush3.bf16.msra.mxu1 %v3652_v27 }
  0xfb   :  { %3380 = vmatprep.subr.bf16.mxu1 %v4055_v18 }
  0xfc   :  { %1003 = vmatpush1.bf16.msra.mxu0 %v4484_v57 }
  0xfd   :  { %1004 = vmatprep.subr.bf16.mxu0 %v4486_v59 }
  0xfe   :  { %3381 = vmatpush3.bf16.msra.mxu1 %v3653_v28 }
  0xff   :  { %3382 = vmatprep.subr.bf16.mxu1 %v4055_v18 }
 0x100   :  { %1005 = vmatpush1.bf16.msra.mxu0 %v4491_v60 }
 0x101   :  { %1006 = vmatprep.subr.bf16.mxu0 %v4493_v62 }
 0x102   :  { %3383 = vmatpush3.bf16.msra.mxu1 %v3654_v29 }
 0x103   :  { %3384 = vmatprep.subr.bf16.mxu1 %v4055_v18 }
 0x104   :  { %1007 = vmatpush1.bf16.msra.mxu0 %v4498_v63 }
 0x105   :  { %1288 = vmatprep.subr.bf16.mxu0 %v4435_v40 }
 0x106   :  { %3385 = vmatpush3.bf16.msra.mxu1 %v3655_v30 }
 0x107   :  { %3390 = vmatprep.subr.bf16.mxu1 %v4055_v18 }
 0x19a   :  { %v485_v31 = vpop.f32.mrb[0].mxu0 }
 0x19b   :  { %v487_v32 = vpop.f32.mrb[1].mxu0  ;;  %v4555_v21 = vadd.f32 %v485_v31, %v311_v55 }
 0x19c   :  { %v489_v33 = vpop.f32.mrb[2].mxu0  ;;  %v526_v35 = vpop.f32.mrb[0].mxu1  ;;  %v4558_v28 = vadd.f32 %v487_v32, %v315_v17 }
 0x19d   :  { %v490_v34 = vpop.f32.mrb[3].mxu0  ;;  %v3348_v36 = vpop.f32.mrb[1].mxu1 }
 0x19e   :  { %v529_v37 = vpop.f32.mrb[2].mxu1 }
 0x19f   :  { %v3349_v38 = vpop.f32.mrb[3].mxu1 }
 0x1ba   :  { %v745_v20 = vpop.f32.mrb[4].mxu0 }
 0x1bb   :  { %v746_v22 = vadd.f32 %v745_v20, %v571_v58  ;;  %v747_v23 = vpop.f32.mrb[5].mxu0  ;;  %v4562_v58 = vsub.s32 2, %v4543_v41 }
 0x1bc   :  { %v748_v24 = vadd.f32 %v747_v23, %v575_v61  ;;  %v749_v25 = vpop.f32.mrb[6].mxu0  ;;  %v786_v33 = vpop.f32.mrb[4].mxu1 }
 0x1bd   :  { %v792_v26 = vadd.f32 %v746_v22, %v4555_v21  ;;  %v750_v27 = vpop.f32.mrb[7].mxu0  ;;  %v3368_v34 = vpop.f32.mrb[5].mxu1  ;;  %v579_v61 = vrot.slane %v566_v49, %v4562_v58  ;;  %v319_v17 = vrot.slane %v306_v46, %v4562_v58 }
 0x1be   :  { %v799_v30 = vadd.f32 %v748_v24, %v4558_v28  ;;  %v789_v37 = vpop.f32.mrb[6].mxu1 }
 0x1bf   :  { %v3105_v29 = vmul.f32 -1.442695, %v792_v26  ;;  %v3369_v38 = vpop.f32.mrb[7].mxu1  ;;  %v787_v22 = vadd.f32 %v786_v33, %v579_v61  ;;  %v4566_v24 = vadd.f32 %v526_v35, %v319_v17  ;;  %v3657_v35 = vld [vmem:[#allocation5 + $0x20] ss:$12 sps:$4 sm:$0xff]  }
 0x1c0   :  { %v3106_v36 = vmul.f32 -1.442695, %v799_v30  ;;  %v3658_v33 = vld [vmem:[#allocation5 + $0x38] ss:$12 sps:$4 sm:$0xff]   ;;  %v3659_v37 = vld [vmem:[#allocation5 + $0x50] ss:$12 sps:$4 sm:$0xff]  }
 0x1c1   :  { %3705 = vpow2.f32 %v3105_v29  ;;  %v3660_v38 = vld [vmem:[#allocation5 + $0x68] ss:$12 sps:$4 sm:$0xff]   ;;  %v847_v61 = vld [vmem:[#allocation10] sm:$0x7] }
 0x1c2   :  { %3707 = vpow2.f32 %v3106_v36  ;;  %v856_v17 = vrot.slane %v847_v61, %v4549_v52 }
 0x1cb   :  { %v3706_v31 = vpop.eup %3705 }
 0x1cc   :  { %v796_v55 = vadd.f32 1.0, %v3706_v31  ;;  %v3708_v32 = vpop.eup %3707  ;;  %v3661_v31 = vld [vmem:[#allocation5 + $0x80] ss:$12 sps:$4 sm:$0xff]  }
 0x1cd   :  { %v803_v20 = vadd.f32 1.0, %v3708_v32  ;;  %v852_v32 = vrot.slane %v847_v61, %v4546_v43 }
 0x1ce   :  { %3709 = vrcp.f32 %v796_v55  ;;  %v3663_v55 = vld [vmem:[#allocation5 + $0xb0] ss:$12 sps:$4 sm:$0xff]  }
 0x1cf   :  { %3711 = vrcp.f32 %v803_v20 }
 0x1d8   :  { %v3710_v23 = vpop.eup %3709 }
 0x1d9   :  { %v806_v25 = vmul.f32 %v3710_v23, %v787_v22  ;;  %v3712_v27 = vpop.eup %3711 }
 0x1da   :  { %v809_v29 = vsub.f32 1.0, %v3712_v27  ;;  %v811_v36 = vmul.f32 %v3712_v27, %v4503_v16  ;;  %v3656_v16 = vld [vmem:[#allocation5 + $0x8] ss:$12 sps:$4 sm:$0xff]  }
 0x1db   :  { %v807_v26 = vadd.f32 %v806_v25, %v4566_v24 }
 0x1dd   :  { %3713 = vtanh.f32 %v807_v26 }
 0x1e7   :  { %v3714_v30 = vpop.eup %3713 }
 0x1e8   :  { %v810_v34 = vmul.f32 %v3714_v30, %v809_v29 }
 0x1ea   :  { %v4570_v49 = vadd.f32 %v811_v36, %v810_v34 }
 0x1ec   :  { %813 = vst [vmem:[#allocation2] sm:$0x3] %v4570_v49  ;;  %v814_v46 = vpack.c.bf16 %v4570_v49, %v4570_v49 }
 0x1ee   :  { %1025 = vmatmul.mubr.bf16.vlgmr.msra.gmra.mrb[8].mxu0 %v814_v46  ;;  %3387 = vmatmul.mubr.bf16.vlgmr.msra.gmra.mrb[8].mxu1 %v814_v46 }
 0x1ef   :  { %1289 = vmatpush1.bf16.msra.mxu0 %v4441_v42  ;;  %1320 = vmatprep.mubr.bf16.mxu0 %v4056_v19 }
 0x1f0   :  { %1290 = vmatprep.subr.bf16.mxu0 %v4447_v44  ;;  %3406 = vmatprep.mubr.msk.bf16.mxu1 %vm4057_vm0, %v4055_v18 }
 0x1f1   :  { %3391 = vmatpush3.bf16.msra.mxu1 %v3656_v16 }
 0x1f2   :  { %3392 = vmatprep.subr.bf16.mxu1 %v4055_v18 }
 0x1f3   :  { %1291 = vmatpush1.bf16.msra.mxu0 %v4450_v45 }
 0x1f4   :  { %1292 = vmatprep.subr.bf16.mxu0 %v4457_v47 }
 0x1f5   :  { %3393 = vmatpush3.bf16.msra.mxu1 %v3657_v35 }
 0x1f6   :  { %3394 = vmatprep.subr.bf16.mxu1 %v4055_v18 }
 0x1f7   :  { %1293 = vmatpush1.bf16.msra.mxu0 %v4460_v48 }
 0x1f8   :  { %1294 = vmatprep.subr.bf16.mxu0 %v4463_v50 }
 0x1f9   :  { %3395 = vmatpush3.bf16.msra.mxu1 %v3658_v33 }
 0x1fa   :  { %3396 = vmatprep.subr.bf16.mxu1 %v4055_v18 }
 0x1fb   :  { %1295 = vmatpush1.bf16.msra.mxu0 %v4468_v51 }
 0x1fc   :  { %1296 = vmatprep.subr.bf16.mxu0 %v4470_v53 }
 0x1fd   :  { %3397 = vmatpush3.bf16.msra.mxu1 %v3659_v37 }
 0x1fe   :  { %3398 = vmatprep.subr.bf16.mxu1 %v4055_v18 }
 0x1ff   :  { %1297 = vmatpush1.bf16.msra.mxu0 %v4475_v54 }
 0x200   :  { %1298 = vmatprep.subr.bf16.mxu0 %v4479_v56 }
 0x201   :  { %3399 = vmatpush3.bf16.msra.mxu1 %v3660_v38 }
 0x202   :  { %3400 = vmatprep.subr.bf16.mxu1 %v4055_v18 }
 0x203   :  { %1299 = vmatpush1.bf16.msra.mxu0 %v4484_v57 }
 0x204   :  { %1300 = vmatprep.subr.bf16.mxu0 %v4486_v59 }
 0x205   :  { %3401 = vmatpush3.bf16.msra.mxu1 %v3661_v31 }
 0x206   :  { %3402 = vmatprep.subr.bf16.mxu1 %v4055_v18 }
 0x207   :  { %1301 = vmatpush1.bf16.msra.mxu0 %v4491_v60 }
 0x208   :  { %1302 = vmatprep.subr.bf16.mxu0 %v4493_v62 }
 0x20b   :  { %1303 = vmatpush1.bf16.msra.mxu0 %v4498_v63 }
 0x20c   :  { %1584 = vmatprep.subr.bf16.mxu0 %v4435_v40  ;;  %v3662_v40 = vld [vmem:[#allocation5 + $0x98] ss:$12 sps:$4 sm:$0xff]  }
 0x20d   :  { %3403 = vmatpush3.bf16.msra.mxu1 %v3662_v40 }
 0x20e   :  { %3404 = vmatprep.subr.bf16.mxu1 %v4055_v18 }
 0x211   :  { %3405 = vmatpush3.bf16.msra.mxu1 %v3663_v55 }
 0x212   :  { %3410 = vmatprep.subr.bf16.mxu1 %v4055_v18 }
 0x2c1   :  { %v1026_v20 = vpop.f32.mrb[8].mxu0  ;;  %v1067_v22 = vpop.f32.mrb[8].mxu1 }
 0x2c2   :  { %v1027_v23 = vadd.f32 %v1026_v20, %v852_v32  ;;  %v1028_v25 = vpop.f32.mrb[9].mxu0  ;;  %v3388_v26 = vpop.f32.mrb[9].mxu1 }
 0x2c3   :  { %v1029_v27 = vadd.f32 %v1028_v25, %v856_v17  ;;  %v1030_v29 = vpop.f32.mrb[10].mxu0  ;;  %v1070_v30 = vpop.f32.mrb[10].mxu1  ;;  %v860_v17 = vrot.slane %v847_v61, %v4562_v58  ;;  %v1102_v26 = vrot.slane %v4570_v49, 6 }
 0x2c4   :  { %v1074_v34 = vrot.slane %v1027_v23, 6  ;;  %v1031_v36 = vpop.f32.mrb[11].mxu0  ;;  %v3389_v46 = vpop.f32.mrb[11].mxu1 }
 0x2c5   :  { %v1084_v16 = vrot.slane %v1029_v27, 6  ;;  %v1068_v20 = vadd.f32 %v1067_v22, %v860_v17 }
 0x2c6   :  { %v1076_v35 = vadd.f32 %v1074_v34, %v4555_v21 }
 0x2c7   :  { %v1086_v33 = vadd.f32 %v1084_v16, %v4558_v28  ;;  %v1094_v23 = vrot.slane %v1068_v20, 6 }
 0x2c8   :  { %v3131_v37 = vmul.f32 -1.442695, %v1076_v35 }
 0x2c9   :  { %v3132_v38 = vmul.f32 -1.442695, %v1086_v33 }
 0x2ca   :  { %3715 = vpow2.f32 %v3131_v37 }
 0x2cb   :  { %3717 = vpow2.f32 %v3132_v38 }
 0x2d4   :  { %v3716_v31 = vpop.eup %3715 }
 0x2d5   :  { %v3718_v40 = vpop.eup %3717  ;;  %v1080_v55 = vadd.f32 1.0, %v3716_v31 }
 0x2d6   :  { %v1090_v32 = vadd.f32 1.0, %v3718_v40 }
 0x2d7   :  { %3719 = vrcp.f32 %v1080_v55 }
 0x2d8   :  { %3721 = vrcp.f32 %v1090_v32 }
 0x2e1   :  { %v3720_v25 = vpop.eup %3719 }
 0x2e2   :  { %v3722_v27 = vpop.eup %3721  ;;  %v1096_v29 = vmul.f32 %v3720_v25, %v1094_v23 }
 0x2e3   :  { %v1104_v30 = vmul.f32 %v3722_v27, %v1102_v26  ;;  %v1099_v36 = vsub.f32 1.0, %v3722_v27 }
 0x2e4   :  { %v1097_v34 = vadd.f32 %v1096_v29, %v4566_v24 }
 0x2e6   :  { %3723 = vtanh.f32 %v1097_v34 }
 0x2f0   :  { %v3724_v46 = vpop.eup %3723 }
 0x2f1   :  { %v1100_v16 = vmul.f32 %v3724_v46, %v1099_v36 }
 0x2f3   :  { %v4609_v35 = vadd.f32 %v1104_v30, %v1100_v16 }
 0x2f5   :  { %1106 = vst [vmem:[#allocation2] sm:$0xc] %v4609_v35  ;;  %v1107_v61 = vpack.c.bf16 %v4609_v35, %v4609_v35  ;;  %v1398_v16 = vrot.slane %v4609_v35, 6  ;;  %v3672_v35 = vld [vmem:[%s4991_s7] sm:$0xff]  }
 0x2f7   :  { %v1158_v22 = vrot.slane %v1107_v61, 1 }
 0x2f9   :  { %1321 = vmatmul.mubr.bf16.vlgmr.msra.gmra.mrb[12].mxu0 %v1158_v22  ;;  %3407 = vmatmul.mubr.bf16.vlgmr.msra.gmra.mrb[12].mxu1 %v1158_v22 }
 0x2fa   :  { %1585 = vmatpush1.bf16.msra.mxu0 %v4441_v42  ;;  %1616 = vmatprep.mubr.bf16.mxu0 %v4056_v19  ;;  %v3664_v19 = vld [vmem:[#allocation5 + $0x8] ss:$12 sps:$4 sm:$0xff]   ;;  %v3665_v42 = vld [vmem:[#allocation5 + $0x20] ss:$12 sps:$4 sm:$0xff]  }
 0x2fb   :  { %1586 = vmatprep.subr.bf16.mxu0 %v4447_v44  ;;  %3426 = vmatprep.mubr.msk.bf16.mxu1 %vm4057_vm0, %v4055_v18  ;;  %v3666_v44 = vld [vmem:[#allocation5 + $0x38] ss:$12 sps:$4 sm:$0xff]  }
 0x2fc   :  { %3411 = vmatpush3.bf16.msra.mxu1 %v3664_v19 }
 0x2fd   :  { %3412 = vmatprep.subr.bf16.mxu1 %v4055_v18 }
 0x2fe   :  { %1587 = vmatpush1.bf16.msra.mxu0 %v4450_v45  ;;  %v3667_v45 = vld [vmem:[#allocation5 + $0x50] ss:$12 sps:$4 sm:$0xff]  }
 0x2ff   :  { %1588 = vmatprep.subr.bf16.mxu0 %v4457_v47  ;;  %v3668_v47 = vld [vmem:[#allocation5 + $0x68] ss:$12 sps:$4 sm:$0xff]  }
 0x300   :  { %3413 = vmatpush3.bf16.msra.mxu1 %v3665_v42 }
 0x301   :  { %3414 = vmatprep.subr.bf16.mxu1 %v4055_v18 }
 0x302   :  { %1589 = vmatpush1.bf16.msra.mxu0 %v4460_v48  ;;  %v3669_v48 = vld [vmem:[#allocation5 + $0x80] ss:$12 sps:$4 sm:$0xff]  }
 0x303   :  { %1590 = vmatprep.subr.bf16.mxu0 %v4463_v50  ;;  %v3670_v50 = vld [vmem:[#allocation5 + $0x98] ss:$12 sps:$4 sm:$0xff]  }
 0x304   :  { %3415 = vmatpush3.bf16.msra.mxu1 %v3666_v44 }
 0x305   :  { %3416 = vmatprep.subr.bf16.mxu1 %v4055_v18 }
 0x306   :  { %1591 = vmatpush1.bf16.msra.mxu0 %v4468_v51  ;;  %v3671_v51 = vld [vmem:[#allocation5 + $0xb0] ss:$12 sps:$4 sm:$0xff]  }
 0x307   :  { %1592 = vmatprep.subr.bf16.mxu0 %v4470_v53  ;;  %v1140_v53 = vld [vmem:[#allocation10] sm:$0x7] }
 0x308   :  { %3417 = vmatpush3.bf16.msra.mxu1 %v3667_v45  ;;  %v1153_v30 = vrot.slane %v1140_v53, %v4562_v58 }
 0x309   :  { %3418 = vmatprep.subr.bf16.mxu1 %v4055_v18 }
 0x30a   :  { %1593 = vmatpush1.bf16.msra.mxu0 %v4475_v54  ;;  %v1145_v54 = vrot.slane %v1140_v53, %v4546_v43 }
 0x30b   :  { %1594 = vmatprep.subr.bf16.mxu0 %v4479_v56  ;;  %v1149_v56 = vrot.slane %v1140_v53, %v4549_v52  ;;  %v3673_v53 = vld [vmem:[%s4992_s8] sm:$0xff]  }
 0x30c   :  { %3419 = vmatpush3.bf16.msra.mxu1 %v3668_v47 }
 0x30d   :  { %3420 = vmatprep.subr.bf16.mxu1 %v4055_v18 }
 0x30e   :  { %1595 = vmatpush1.bf16.msra.mxu0 %v4484_v57 }
 0x30f   :  { %1596 = vmatprep.subr.bf16.mxu0 %v4486_v59 }
 0x310   :  { %3421 = vmatpush3.bf16.msra.mxu1 %v3669_v48 }
 0x311   :  { %3422 = vmatprep.subr.bf16.mxu1 %v4055_v18 }
 0x312   :  { %1597 = vmatpush1.bf16.msra.mxu0 %v4491_v60 }
 0x313   :  { %1598 = vmatprep.subr.bf16.mxu0 %v4493_v62 }
 0x314   :  { %3423 = vmatpush3.bf16.msra.mxu1 %v3670_v50 }
 0x315   :  { %3424 = vmatprep.subr.bf16.mxu1 %v4055_v18 }
 0x316   :  { %1599 = vmatpush1.bf16.msra.mxu0 %v4498_v63 }
 0x317   :  { %3430 = vmatprep.subr.bf16.mxu0 %v4055_v18 }
 0x318   :  { %3425 = vmatpush3.bf16.msra.mxu1 %v3671_v51 }
 0x319   :  { %3450 = vmatprep.subr.bf16.mxu1 %v4055_v18 }
 0x3cc   :  { %v1322_v57 = vpop.f32.mrb[12].mxu0  ;;  %v1363_v59 = vpop.f32.mrb[12].mxu1 }
 0x3cd   :  { %v1323_v60 = vadd.f32 %v1322_v57, %v1145_v54  ;;  %v1324_v62 = vpop.f32.mrb[13].mxu0  ;;  %v3408_v63 = vpop.f32.mrb[13].mxu1  ;;  %v1364_v34 = vadd.f32 %v1363_v59, %v1153_v30  ;;  %v3674_v54 = vld [vmem:[%s4991_s7 + $0x8] sm:$0xff]   ;;  %v3676_v57 = vld [vmem:[%s4991_s7 + $0x10] sm:$0xff]  }
 0x3ce   :  { %v1325_v49 = vadd.f32 %v1324_v62, %v1149_v56  ;;  %v1326_v33 = vpop.f32.mrb[14].mxu0  ;;  %v1366_v37 = vpop.f32.mrb[14].mxu1  ;;  %v3675_v56 = vld [vmem:[%s4992_s8 + $0x8] sm:$0xff]   ;;  %v3677_v59 = vld [vmem:[%s4992_s8 + $0x10] sm:$0xff]   ;;  %v3679_v62 = vld [vmem:[%s4992_s8 + $0x18] sm:$0xff]  }
 0x3cf   :  { %v1370_v38 = vrot.slane %v1323_v60, 4  ;;  %v1327_v31 = vpop.f32.mrb[15].mxu0  ;;  %v3409_v40 = vpop.f32.mrb[15].mxu1  ;;  %v1390_v36 = vrot.slane %v1364_v34, 4  ;;  %v3678_v60 = vld [vmem:[%s4991_s7 + $0x18] sm:$0xff]   ;;  %v3680_v63 = vld [vmem:[%s4991_s7 + $0x20] sm:$0xff]  }
 0x3d0   :  { %v1380_v55 = vrot.slane %v1325_v49, 4  ;;  %v3681_v49 = vld [vmem:[%s4992_s8 + $0x20] sm:$0xff]   ;;  %v3682_v33 = vld [vmem:[%s4991_s7 + $0x28] sm:$0xff]   ;;  %v3685_v31 = vld [vmem:[%s4992_s8 + $0x30] sm:$0xff]  }
 0x3d1   :  { %v1372_v32 = vadd.f32 %v1370_v38, %v4555_v21  ;;  %v3683_v37 = vld [vmem:[%s4992_s8 + $0x28] sm:$0xff]   ;;  %v3684_v38 = vld [vmem:[%s4991_s7 + $0x30] sm:$0xff]   ;;  %v3686_v40 = vld [vmem:[%s4991_s7 + $0x38] sm:$0xff]  }
 0x3d2   :  { %v1382_v17 = vadd.f32 %v1380_v55, %v4558_v28  ;;  %v3687_v55 = vld [vmem:[%s4992_s8 + $0x38] sm:$0xff]  }
 0x3d3   :  { %v3157_v20 = vmul.f32 -1.442695, %v1372_v32  ;;  %v4723_v32 = vld [vmem:[%s4990_s6] sm:$0xf] }
 0x3d4   :  { %v3158_v23 = vmul.f32 -1.442695, %v1382_v17  ;;  %v4728_v17 = vld [vmem:[%s4990_s6 + $0x4] sm:$0xf] }
 0x3d5   :  { %3725 = vpow2.f32 %v3157_v20  ;;  %v3193_v20 = vcombine.low %v4723_v32, %v4728_v17 }
 0x3d6   :  { %3727 = vpow2.f32 %v3158_v23  ;;  %v1436_v23 = vld [vmem:[#allocation10] sm:$0x7] }
 0x3df   :  { %v3726_v25 = vpop.eup %3725 }
 0x3e0   :  { %v3728_v26 = vpop.eup %3727  ;;  %v1376_v27 = vadd.f32 1.0, %v3726_v25  ;;  %v1441_v25 = vrot.slane %v1436_v23, %v4546_v43 }
 0x3e1   :  { %v1386_v29 = vadd.f32 1.0, %v3728_v26  ;;  %v1445_v26 = vrot.slane %v1436_v23, %v4549_v52 }
 0x3e2   :  { %3729 = vrcp.f32 %v1376_v27 }
 0x3e3   :  { %3731 = vrcp.f32 %v1386_v29 }
 0x3ec   :  { %v3730_v46 = vpop.eup %3729 }
 0x3ed   :  { %v3732_v61 = vpop.eup %3731  ;;  %v1392_v22 = vmul.f32 %v3730_v46, %v1390_v36 }
 0x3ee   :  { %v1400_v19 = vmul.f32 %v3732_v61, %v1398_v16  ;;  %v1395_v44 = vsub.f32 1.0, %v3732_v61 }
 0x3ef   :  { %v1393_v42 = vadd.f32 %v1392_v22, %v4566_v24 }
 0x3f1   :  { %3733 = vtanh.f32 %v1393_v42 }
 0x3fb   :  { %v3734_v45 = vpop.eup %3733 }
 0x3fc   :  { %v1396_v47 = vmul.f32 %v3734_v45, %v1395_v44 }
 0x3fe   :  { %v4648_v48 = vadd.f32 %v1400_v19, %v1396_v47 }
 0x400   :  { %1402 = vst [vmem:[#allocation2] sm:$0x30] %v4648_v48  ;;  %v1403_v50 = vpack.c.bf16 %v4648_v48, %v4648_v48 }
 0x402   :  { %v1454_v51 = vrot.slane %v1403_v50, 2 }
 0x404   :  { %1617 = vmatmul.mubr.bf16.vlgmr.msra.gmra.mrb[16].mxu0 %v1454_v51  ;;  %3427 = vmatmul.mubr.bf16.vlgmr.msra.gmra.mrb[16].mxu1 %v1454_v51 }
 0x405   :  { %3446 = vmatprep.mubr.msk.bf16.mxu0 %vm4057_vm0, %v4055_v18  ;;  %3466 = vmatprep.mubr.msk.bf16.mxu1 %vm4057_vm0, %v4055_v18 }
 0x406   :  { %3431 = vmatpush3.bf16.msra.mxu0 %v3672_v35  ;;  %3451 = vmatpush3.bf16.msra.mxu1 %v3673_v53 }
 0x407   :  { %3432 = vmatprep.subr.bf16.mxu0 %v4055_v18  ;;  %3452 = vmatprep.subr.bf16.mxu1 %v4055_v18 }
 0x40a   :  { %3433 = vmatpush3.bf16.msra.mxu0 %v3674_v54  ;;  %3453 = vmatpush3.bf16.msra.mxu1 %v3675_v56 }
 0x40b   :  { %3434 = vmatprep.subr.bf16.mxu0 %v4055_v18  ;;  %3454 = vmatprep.subr.bf16.mxu1 %v4055_v18 }
 0x40e   :  { %3435 = vmatpush3.bf16.msra.mxu0 %v3676_v57  ;;  %3455 = vmatpush3.bf16.msra.mxu1 %v3677_v59  ;;  %v1449_v57 = vrot.slane %v1436_v23, %v4562_v58 }
 0x40f   :  { %3436 = vmatprep.subr.bf16.mxu0 %v4055_v18  ;;  %3456 = vmatprep.subr.bf16.mxu1 %v4055_v18 }
 0x412   :  { %3437 = vmatpush3.bf16.msra.mxu0 %v3678_v60  ;;  %3457 = vmatpush3.bf16.msra.mxu1 %v3679_v62 }
 0x413   :  { %3438 = vmatprep.subr.bf16.mxu0 %v4055_v18  ;;  %3458 = vmatprep.subr.bf16.mxu1 %v4055_v18 }
 0x416   :  { %3439 = vmatpush3.bf16.msra.mxu0 %v3680_v63  ;;  %3459 = vmatpush3.bf16.msra.mxu1 %v3681_v49  ;;  %v1694_v63 = vrot.slane %v4648_v48, 6 }
 0x417   :  { %3440 = vmatprep.subr.bf16.mxu0 %v4055_v18  ;;  %3460 = vmatprep.subr.bf16.mxu1 %v4055_v18 }
 0x41a   :  { %3441 = vmatpush3.bf16.msra.mxu0 %v3682_v33  ;;  %3461 = vmatpush3.bf16.msra.mxu1 %v3683_v37 }
 0x41b   :  { %3442 = vmatprep.subr.bf16.mxu0 %v4055_v18  ;;  %3462 = vmatprep.subr.bf16.mxu1 %v4055_v18 }
 0x41e   :  { %3443 = vmatpush3.bf16.msra.mxu0 %v3684_v38  ;;  %3463 = vmatpush3.bf16.msra.mxu1 %v3685_v31 }
 0x41f   :  { %3444 = vmatprep.subr.bf16.mxu0 %v4055_v18  ;;  %3464 = vmatprep.subr.bf16.mxu1 %v4055_v18 }
 0x422   :  { %3445 = vmatpush3.bf16.msra.mxu0 %v3686_v40  ;;  %3465 = vmatpush3.bf16.msra.mxu1 %v3687_v55 }
 0x423   :  { %3470 = vmatprep.subr.bf16.mxu0 %v4055_v18  ;;  %3476 = vmatprep.subr.bf16.mxu1 %v4055_v18 }
 0x425   :  { %3467 = vmatmul.mubr.bf16.vlgmr.msra.gmra.mrb[20].mxu1 %v3193_v20 }
 0x426   :  { %3478 = vmatprep.mubr.msk.bf16.mxu1 %vm4057_vm0, %v4055_v18 }
 0x4d7   :  { %v1618_v27 = vpop.f32.mrb[16].mxu0  ;;  %v1659_v29 = vpop.f32.mrb[16].mxu1 }
 0x4d8   :  { %v1619_v30 = vadd.f32 %v1618_v27, %v1441_v25  ;;  %v1620_v34 = vpop.f32.mrb[17].mxu0  ;;  %v3428_v36 = vpop.f32.mrb[17].mxu1  ;;  %v1660_v59 = vadd.f32 %v1659_v29, %v1449_v57 }
 0x4d9   :  { %v1621_v46 = vadd.f32 %v1620_v34, %v1445_v26  ;;  %v1622_v16 = vpop.f32.mrb[18].mxu0  ;;  %v1662_v61 = vpop.f32.mrb[18].mxu1 }
 0x4da   :  { %v1666_v22 = vrot.slane %v1619_v30, 2  ;;  %v1623_v19 = vpop.f32.mrb[19].mxu0  ;;  %v3429_v42 = vpop.f32.mrb[19].mxu1  ;;  %v1686_v60 = vrot.slane %v1660_v59, 2  ;;  %v4058_v30 = vmov 1966171168  }
 0x4db   :  { %v1676_v44 = vrot.slane %v1621_v46, 2  ;;  %v1929_v34 = vunpack.c.l.s4 %v4058_v30 }
 0x4dc   :  { %v1668_v45 = vadd.f32 %v1666_v22, %v4555_v21 }
 0x4dd   :  { %v1678_v47 = vadd.f32 %v1676_v44, %v4558_v28  ;;  %v1930_v36 = vunpack.c.0.s8 %v1929_v34 }
 0x4de   :  { %v3183_v50 = vmul.f32 -1.442695, %v1668_v45 }
 0x4df   :  { %v3184_v51 = vmul.f32 -1.442695, %v1678_v47  ;;  %v1933_v46 = vsub.s32 %v1930_v36, %v4543_v41 }
 0x4e0   :  { %3735 = vpow2.f32 %v3183_v50 }
 0x4e1   :  { %3737 = vpow2.f32 %v3184_v51 }
 0x4ea   :  { %v3736_v35 = vpop.eup %3735 }
 0x4eb   :  { %v3738_v53 = vpop.eup %3737  ;;  %v1672_v54 = vadd.f32 1.0, %v3736_v35 }
 0x4ec   :  { %v1682_v56 = vadd.f32 1.0, %v3738_v53 }
 0x4ed   :  { %3739 = vrcp.f32 %v1672_v54 }
 0x4ee   :  { %3741 = vrcp.f32 %v1682_v56 }
 0x4f7   :  { %v3740_v62 = vpop.eup %3739 }
 0x4f8   :  { %v3742_v21 = vpop.eup %3741  ;;  %v1688_v49 = vmul.f32 %v3740_v62, %v1686_v60 }
 0x4f9   :  { %v1696_v28 = vmul.f32 %v3742_v21, %v1694_v63  ;;  %v1691_v37 = vsub.f32 1.0, %v3742_v21  ;;  %v3202_v63 = vld [vmem:[#allocation11] ss:$0 sm:$0xff] }
 0x4fa   :  { %v1689_v33 = vadd.f32 %v1688_v49, %v4566_v24  ;;  %v1919_v24 = vpop.f32.mrb[20].mxu1 }
 0x4fb   :  { %v3468_v48 = vpop.f32.mrb[21].mxu1 }
 0x4fc   :  { %3743 = vtanh.f32 %v1689_v33  ;;  %v1922_v27 = vpop.f32.mrb[22].mxu1 }
 0x4fd   :  { %v3469_v29 = vpop.f32.mrb[23].mxu1 }
 0x506   :  { %v3744_v38 = vpop.eup %3743 }
 0x507   :  { %v1692_v31 = vmul.f32 %v3744_v38, %v1691_v37 }
 0x509   :  { %v1697_v40 = vadd.f32 %v1696_v28, %v1692_v31 }
 0x50b   :  { %1698 = vst [vmem:[#allocation2] sm:$0xc0] %v1697_v40  ;;  %1699 = vst [vmem:[#allocation19 - $0x6] sm:$0xc0] %v1697_v40 }
 0x512   :  { %v1702_v55 = vld [vmem:[#allocation2 + $0x1] ss:$2 sm:$0xf]  ;;  %v1700_v23 = vld [vmem:[#allocation2] ss:$2 sm:$0xf] }
 0x513   :  { %v1704_v20 = vrot.slane %v1702_v55, 4 }
 0x515   :  { %v1707_v25 = vsel %vm1706_vm1, %v1700_v23, %v1704_v20 }
 0x516   :  { %v4743_v26 = vpack.c.bf16 %v1707_v25, %v1707_v25 }
 0x518   :  { %3447 = vmatmul.mubr.bf16.vlgmr.msra.gmra.mrb[20].mxu0 %v4743_v26 }
 0x519   :  { %3472 = vmatprep.mubr.msk.bf16.mxu0 %vm4057_vm0, %v4055_v18 }
 0x5eb   :  { %v1807_v16 = vpop.f32.mrb[20].mxu0 }
 0x5ec   :  { %v1934_v61 = vrot.slane %v1807_v16, %v1933_v46  ;;  %v2239_v22 = vcombine.high %v1807_v16, %v1807_v16  ;;  %v3448_v19 = vpop.f32.mrb[21].mxu0 }
 0x5ed   :  { %v1810_v42 = vpop.f32.mrb[22].mxu0 }
 0x5ee   :  { %v1935_v44 = vcombine.high %v1934_v61, %v1934_v61  ;;  %v1942_v45 = vrot.slane %v1934_v61, %v1933_v46  ;;  %v2246_v47 = vrot.slane %v2239_v22, %v1933_v46  ;;  %v3449_v50 = vpop.f32.mrb[23].mxu0 }
 0x5f0   :  { %v1949_v51 = vrot.slane %v1935_v44, %v1933_v46  ;;  %v1950_v35 = vcombine.high %v1942_v45, %v1942_v45  ;;  %v1955_v53 = vrot.slane %v1942_v45, %v4546_v43  ;;  %v2247_v54 = vcombine.high %v2246_v47, %v2246_v47 }
 0x5f1   :  { %v2254_v56 = vrot.slane %v2246_v47, %v1933_v46 }
 0x5f2   :  { %v1951_v57 = vcombine.high %v1949_v51, %v1949_v51  ;;  %v2261_v59 = vrot.slane %v2247_v54, %v1933_v46  ;;  %v1959_v60 = vrot.slane %v1949_v51, %v4546_v43  ;;  %v1963_v62 = vrot.slane %v1950_v35, %v4546_v43 }
 0x5f3   :  { %v2262_v21 = vcombine.high %v2254_v56, %v2254_v56  ;;  %v1972_v49 = vadd.f32 %v1955_v53, %v1919_v24  ;;  %v2267_v28 = vrot.slane %v2254_v56, %v4546_v43 }
 0x5f4   :  { %v1967_v33 = vrot.slane %v1951_v57, %v4546_v43  ;;  %v1973_v37 = vadd.f32 %v1959_v60, %v1919_v24  ;;  %v1974_v38 = vadd.f32 %v1963_v62, %v1919_v24  ;;  %v2263_v31 = vcombine.high %v2261_v59, %v2261_v59 }
 0x5f5   :  { %v1983_v40 = vadd.f32 %v3202_v63, %v1972_v49  ;;  %v2271_v55 = vrot.slane %v2261_v59, %v4546_v43  ;;  %v2275_v20 = vrot.slane %v2262_v21, %v4546_v43  ;;  %v2284_v23 = vadd.f32 %v2267_v28, %v1922_v27 }
 0x5f6   :  { %v1975_v25 = vadd.f32 %v1967_v33, %v1919_v24  ;;  %v1984_v48 = vadd.f32 %v3202_v63, %v1973_v37  ;;  %v2279_v29 = vrot.slane %v2263_v31, %v4546_v43  ;;  %v1985_v42 = vadd.f32 %v3202_v63, %v1974_v38  ;;  %v3203_v24 = vld [vmem:[%s4994_s10] ss:$0 sm:$0xff] }
 0x5f7   :  { %3745 = vtanh.f32 %v1983_v40  ;;  %v2285_v30 = vadd.f32 %v2271_v55, %v1922_v27  ;;  %v2286_v34 = vadd.f32 %v2275_v20, %v1922_v27  ;;  %v2288_v36 = vadd.f32 %v3202_v63, %v2284_v23 }
 0x5f8   :  { %v2287_v46 = vadd.f32 %v2279_v29, %v1922_v27  ;;  %3747 = vtanh.f32 %v1984_v48  ;;  %v1986_v19 = vadd.f32 %v3202_v63, %v1975_v25  ;;  %v2019_v48 = vand.u32 127, %v308_v39 }
 0x5f9   :  { %v2290_v16 = vadd.f32 %v3202_v63, %v2286_v34  ;;  %v2289_v22 = vadd.f32 %v3202_v63, %v2285_v30  ;;  %3749 = vtanh.f32 %v2288_v36 }
 0x5fa   :  { %v2291_v61 = vadd.f32 %v3202_v63, %v2287_v46  ;;  %v4770_v34 = vsub.s32 %v2019_v48, %v4543_v41  ;;  %v4794_v48 = vsub.s32 3, %v4543_v41 }
 0x5fb   :  { %3751 = vtanh.f32 %v2290_v16 }
 0x5fc   :  { %3753 = vtanh.f32 %v2291_v61 }
 0x5fd   :  { %3755 = vtanh.f32 %v2289_v22 }
 0x5fe   :  { %3757 = vtanh.f32 %v1986_v19 }
 0x5ff   :  { %3759 = vtanh.f32 %v1985_v42 }
 0x601   :  { %v3746_v44 = vpop.eup %3745 }
 0x602   :  { %v1997_v45 = vmul.f32 %v3746_v44, %v3203_v24  ;;  %v3748_v27 = vpop.eup %3747 }
 0x603   :  { %v3750_v50 = vpop.eup %3749  ;;  %v1998_v57 = vmul.f32 %v3748_v27, %v3203_v24 }
 0x604   :  { %v2002_v47 = vsel %vm2001_vm2, %v1997_v45, 0.0  ;;  %v2296_v51 = vmul.f32 %v3750_v50, %v3203_v24 }
 0x605   :  { %2003 = vadd.xlane.f32.xlu1 %v2002_v47  ;;  %v3752_v35 = vpop.eup %3751  ;;  %v2005_v21 = vsel %vm2001_vm2, %v1998_v57, 0.0 }
 0x606   :  { %v3754_v53 = vpop.eup %3753  ;;  %v2300_v54 = vsel %vm2001_vm2, %v2296_v51, 0.0  ;;  %v2298_v56 = vmul.f32 %v3752_v35, %v3203_v24 }
 0x607   :  { %v3756_v59 = vpop.eup %3755  ;;  %2301 = vadd.xlane.f32.xlu0 %v2300_v54  ;;  %v2299_v62 = vmul.f32 %v3754_v53, %v3203_v24 }
 0x608   :  { %v2306_v60 = vsel %vm2001_vm2, %v2298_v56, 0.0  ;;  %v3758_v63 = vpop.eup %3757  ;;  %v2297_v49 = vmul.f32 %v3756_v59, %v3203_v24 }
 0x609   :  { %2307 = vadd.xlane.f32.xlu1 %v2306_v60  ;;  %v3760_v28 = vpop.eup %3759  ;;  %v2309_v33 = vsel %vm2001_vm2, %v2299_v62, 0.0  ;;  %v2000_v37 = vmul.f32 %v3758_v63, %v3203_v24 }
 0x60a   :  { %v2303_v38 = vsel %vm2001_vm2, %v2297_v49, 0.0  ;;  %v1999_v31 = vmul.f32 %v3760_v28, %v3203_v24 }
 0x60b   :  { %2006 = vadd.xlane.f32.xlu0 %v2005_v21  ;;  %v2011_v40 = vsel %vm2001_vm2, %v2000_v37, 0.0 }
 0x60c   :  { %v2008_v55 = vsel %vm2001_vm2, %v1999_v31, 0.0 }
 0x60d   :  { %2310 = vadd.xlane.f32.xlu1 %v2309_v33 }
 0x60f   :  { %2304 = vadd.xlane.f32.xlu0 %v2303_v38 }
 0x611   :  { %2012 = vadd.xlane.f32.xlu1 %v2011_v40 }
 0x613   :  { %2009 = vadd.xlane.f32.xlu0 %v2008_v55 }
 0x692   :  { %v2004_v20 = vpop.xlane.xlu1 %2003 }
 0x693   :  { %v2023_v24 = vrot.slane %v2004_v20, %v4770_v34 }
 0x694   :  { %v2302_v23 = vpop.xlane.xlu0 %2301 }
 0x695   :  { %v2319_v46 = vrot.slane %v2302_v23, %v4770_v34 }
 0x696   :  { %v2308_v25 = vpop.xlane.xlu1 %2307 }
 0x697   :  { %v2327_v61 = vrot.slane %v2308_v25, %v4770_v34 }
 0x698   :  { %v2007_v29 = vpop.xlane.xlu0 %2006 }
 0x699   :  { %v2027_v22 = vrot.slane %v2007_v29, %v4770_v34 }
 0x69a   :  { %v2311_v30 = vpop.xlane.xlu1 %2310 }
 0x69b   :  { %v2331_v19 = vrot.slane %v2311_v30, %v4770_v34  ;;  %v2037_v35 = vsel %vm2036_vm4, %v2027_v22, %v2023_v24 }
 0x69c   :  { %v2305_v36 = vpop.xlane.xlu0 %2304 }
 0x69d   :  { %v2323_v16 = vrot.slane %v2305_v36, %v4770_v34 }
 0x69e   :  { %v2013_v39 = vpop.xlane.xlu1 %2012 }
 0x69f   :  { %v2332_v42 = vsel %vm2036_vm4, %v2323_v16, %v2319_v46  ;;  %v2035_v50 = vrot.slane %v2013_v39, %v4770_v34 }
 0x6a0   :  { %v2010_v44 = vpop.xlane.xlu0 %2009  ;;  %v2333_v45 = vsel %vm2038_vm3, %v2327_v61, %v2332_v42 }
 0x6a1   :  { %v2031_v27 = vrot.slane %v2010_v44, %v4770_v34  ;;  %v2334_v47 = vsel %vm2040_vm5, %v2331_v19, %v2333_v45 }
 0x6a2   :  { %v2336_v51 = vsel %vm2043_vm6, %v2334_v47, -inf }
 0x6a3   :  { %2337 = vmax.xlane.f32.xlu0 %v2336_v51  ;;  %v2039_v53 = vsel %vm2038_vm3, %v2031_v27, %v2037_v35 }
 0x6a4   :  { %v2041_v54 = vsel %vm2040_vm5, %v2035_v50, %v2039_v53 }
 0x6a5   :  { %v2044_v56 = vsel %vm2043_vm6, %v2041_v54, -inf }
 0x6a6   :  { %2045 = vmax.xlane.f32.xlu1 %v2044_v56 }
 0x730   :  { %v2338_v57 = vpop.xlane.xlu0 %2337 }
 0x731   :  { %v2343_v59 = vrot.slane %v2338_v57, %v4546_v43  ;;  %v2347_v31 = vrot.slane %v2338_v57, %v4549_v52 }
 0x733   :  { %v2360_v60 = vsub.f32 %v2302_v23, %v2343_v59  ;;  %v2046_v62 = vpop.xlane.xlu1 %2045  ;;  %v2351_v23 = vrot.slane %v2338_v57, %v4562_v58  ;;  %v2361_v46 = vsub.f32 %v2305_v36, %v2347_v31 }
 0x734   :  { %v2051_v63 = vrot.slane %v2046_v62, %v4546_v43  ;;  %v2055_v21 = vrot.slane %v2046_v62, %v4549_v52  ;;  %v2059_v33 = vrot.slane %v2046_v62, %v4562_v58  ;;  %v2063_v36 = vrot.slane %v2046_v62, %v4794_v48 }
 0x735   :  { %v2364_v49 = vmul.f32 1.442695, %v2360_v60  ;;  %v2366_v22 = vmul.f32 1.442695, %v2361_v46 }
 0x736   :  { %v2068_v28 = vsub.f32 %v2004_v20, %v2051_v63  ;;  %v2069_v37 = vsub.f32 %v2007_v29, %v2055_v21  ;;  %v2070_v40 = vsub.f32 %v2010_v44, %v2059_v33  ;;  %v2355_v20 = vrot.slane %v2338_v57, %v4794_v48 }
 0x737   :  { %3761 = vpow2.f32 %v2364_v49  ;;  %v2362_v29 = vsub.f32 %v2308_v25, %v2351_v23  ;;  %v2071_v45 = vsub.f32 %v2013_v39, %v2063_v36 }
 0x738   :  { %v2072_v38 = vmul.f32 1.442695, %v2068_v28  ;;  %v2074_v55 = vmul.f32 1.442695, %v2069_v37  ;;  %v2076_v16 = vmul.f32 1.442695, %v2070_v40  ;;  %v2363_v41 = vsub.f32 %v2311_v30, %v2355_v20 }
 0x739   :  { %v2368_v42 = vmul.f32 1.442695, %v2362_v29  ;;  %v2078_v25 = vmul.f32 1.442695, %v2071_v45 }
 0x73a   :  { %3763 = vpow2.f32 %v2072_v38  ;;  %v2370_v44 = vmul.f32 1.442695, %v2363_v41 }
 0x73b   :  { %3765 = vpow2.f32 %v2074_v55 }
 0x73c   :  { %3767 = vpow2.f32 %v2076_v16 }
 0x73d   :  { %3769 = vpow2.f32 %v2366_v22 }
 0x73e   :  { %3771 = vpow2.f32 %v2368_v42 }
 0x73f   :  { %3773 = vpow2.f32 %v2370_v44 }
 0x740   :  { %3775 = vpow2.f32 %v2078_v25 }
 0x741   :  { %v4797_v61 = vpop.eup %3761 }
 0x742   :  { %2377 = vperm.xlu0 %3582, %v4797_v61  }
 0x744   :  { %v4801_v19 = vpop.eup %3763 }
 0x745   :  { %2085 = vperm.xlu1 %3583, %v4801_v19   ;;  %v4805_v24 = vpop.eup %3765 }
 0x746   :  { %v4808_v27 = vpop.eup %3767 }
 0x747   :  { %v3770_v47 = vpop.eup %3769 }
 0x748   :  { %v4811_v30 = vpop.eup %3771 }
 0x749   :  { %2088 = vperm.xlu1 %3583, %v4805_v24   ;;  %v3774_v50 = vpop.eup %3773 }
 0x74a   :  { %v4814_v51 = vpop.eup %3775 }
 0x74d   :  { %2091 = vperm.xlu1 %3583, %v4808_v27  }
 0x751   :  { %2380 = vperm.xlu1 %3583, %v3770_v47  }
 0x755   :  { %2383 = vperm.xlu1 %3583, %v4811_v30  }
 0x759   :  { %2386 = vperm.xlu1 %3583, %v3774_v50  }
 0x75d   :  { %2094 = vperm.xlu1 %3583, %v4814_v51  }
 0x7c1   :  { %v2378_v56 = vpop.permute.xlu0 %2377 }
 0x7c2   :  { %v2391_v62 = vrot.slane %v2378_v56, %v4770_v34 }
 0x7c4   :  { %v2086_v39 = vpop.permute.xlu1 %2085 }
 0x7c5   :  { %v2099_v38 = vrot.slane %v2086_v39, %v4770_v34 }
 0x7c8   :  { %v2089_v35 = vpop.permute.xlu1 %2088 }
 0x7c9   :  { %v2103_v21 = vrot.slane %v2089_v35, %v4770_v34 }
 0x7cb   :  { %v2112_v23 = vsel %vm2036_vm4, %v2103_v21, %v2099_v38 }
 0x7cc   :  { %v2092_v53 = vpop.permute.xlu1 %2091 }
 0x7cd   :  { %v2107_v33 = vrot.slane %v2092_v53, %v4770_v34 }
 0x7cf   :  { %v2113_v16 = vsel %vm2038_vm3, %v2107_v33, %v2112_v23 }
 0x7d0   :  { %v2381_v54 = vpop.permute.xlu1 %2380 }
 0x7d1   :  { %v2395_v59 = vrot.slane %v2381_v54, %v4770_v34 }
 0x7d3   :  { %v2404_v49 = vsel %vm2036_vm4, %v2395_v59, %v2391_v62 }
 0x7d4   :  { %v2384_v57 = vpop.permute.xlu1 %2383 }
 0x7d5   :  { %v2399_v60 = vrot.slane %v2384_v57, %v4770_v34 }
 0x7d7   :  { %v2405_v37 = vsel %vm2038_vm3, %v2399_v60, %v2404_v49 }
 0x7d8   :  { %v2387_v63 = vpop.permute.xlu1 %2386 }
 0x7d9   :  { %v2403_v28 = vrot.slane %v2387_v63, %v4770_v34 }
 0x7db   :  { %v2406_v31 = vsel %vm2040_vm5, %v2403_v28, %v2405_v37 }
 0x7dc   :  { %v2095_v40 = vpop.permute.xlu1 %2094  ;;  %v2408_v55 = vsel %vm2043_vm6, %v2406_v31, 0.0 }
 0x7dd   :  { %v2111_v46 = vrot.slane %v2095_v40, %v4770_v34  ;;  %2409 = vadd.xlane.f32.xlu1 %v2408_v55 }
 0x7df   :  { %v2114_v20 = vsel %vm2040_vm5, %v2111_v46, %v2113_v16 }
 0x7e0   :  { %v2116_v29 = vsel %vm2043_vm6, %v2114_v20, 0.0 }
 0x7e1   :  { %2117 = vadd.xlane.f32.xlu0 %v2116_v29 }
 0x86a   :  { %v2410_v22 = vpop.xlane.xlu1 %2409 }
 0x86b   :  { %v2415_v41 = vrot.slane %v2410_v22, %v4546_v43  ;;  %v2419_v42 = vrot.slane %v2410_v22, %v4549_v52  ;;  %v2427_v44 = vrot.slane %v2410_v22, %v4794_v48  ;;  %v2423_v39 = vrot.slane %v2410_v22, %v4562_v58 }
 0x86d   :  { %3777 = vrcp.f32 %v2415_v41  ;;  %v2488_v41 = vsel %vm1706_vm1, %v4728_v17, 0 }
 0x86e   :  { %v2118_v36 = vpop.xlane.xlu0 %2117  ;;  %3779 = vrcp.f32 %v2419_v42  ;;  %3477 = vmatpush3.bf16.msra.mxu1 %v2488_v41 }
 0x86f   :  { %v2123_v45 = vrot.slane %v2118_v36, %v4546_v43  ;;  %v2127_v25 = vrot.slane %v2118_v36, %v4549_v52  ;;  %v2135_v35 = vrot.slane %v2118_v36, %v4794_v48  ;;  %v2131_v53 = vrot.slane %v2118_v36, %v4562_v58  ;;  %3502 = vmatprep.subr.bf16.mxu1 %v4055_v18 }
 0x871   :  { %3781 = vrcp.f32 %v2123_v45 }
 0x872   :  { %3783 = vrcp.f32 %v2127_v25 }
 0x873   :  { %3785 = vrcp.f32 %v2427_v44 }
 0x874   :  { %3787 = vrcp.f32 %v2423_v39 }
 0x875   :  { %3789 = vrcp.f32 %v2135_v35 }
 0x876   :  { %3791 = vrcp.f32 %v2131_v53 }
 0x877   :  { %v3778_v54 = vpop.eup %3777 }
 0x878   :  { %v3780_v56 = vpop.eup %3779  ;;  %v2433_v52 = vmul.f32 %v3778_v54, %v4797_v61 }
 0x879   :  { %v2435_v63 = vmul.f32 %v3780_v56, %v3770_v47 }
 0x87a   :  { %v2440_v33 = vpack.c.bf16 %v2433_v52, %v2433_v52 }
 0x87b   :  { %v3782_v57 = vpop.eup %3781  ;;  %v2441_v31 = vpack.c.bf16 %v2435_v63, %v2435_v63 }
 0x87c   :  { %v3784_v59 = vpop.eup %3783  ;;  %v2141_v43 = vmul.f32 %v3782_v57, %v4801_v19  ;;  %v2448_v19 = vunpack.c.l.b16 %v2440_v33 }
 0x87d   :  { %v3786_v60 = vpop.eup %3785  ;;  %v2143_v62 = vmul.f32 %v3784_v59, %v4805_v24  ;;  %v2449_v24 = vunpack.c.l.b16 %v2441_v31 }
 0x87e   :  { %v3788_v21 = vpop.eup %3787  ;;  %v2148_v49 = vpack.c.bf16 %v2141_v43, %v2141_v43  ;;  %v2439_v58 = vmul.f32 %v3786_v60, %v3774_v50 }
 0x87f   :  { %v2149_v48 = vpack.c.bf16 %v2143_v62, %v2143_v62  ;;  %v3790_v37 = vpop.eup %3789  ;;  %v2437_v40 = vmul.f32 %v3788_v21, %v4811_v30 }
 0x880   :  { %v2156_v28 = vunpack.c.l.b16 %v2148_v49  ;;  %v3792_v55 = vpop.eup %3791  ;;  %v2443_v61 = vpack.c.bf16 %v2439_v58, %v2439_v58  ;;  %v2147_v23 = vmul.f32 %v3790_v37, %v4814_v51  ;;  %v2197_v51 = vsel %vm1706_vm1, %v4723_v32, 0  ;;  %v3690_v37 = vld [vmem:[#allocation13 + $0x8] sm:$0xff]  }
 0x881   :  { %v2157_v38 = vunpack.c.l.b16 %v2149_v48  ;;  %v2442_v47 = vpack.c.bf16 %v2437_v40, %v2437_v40  ;;  %v2145_v46 = vmul.f32 %v3792_v55, %v4808_v27  ;;  %3471 = vmatpush3.bf16.msra.mxu0 %v2197_v51 }
 0x882   :  { %2161 = vperm.xlu0 %3582, %v2156_v28   ;;  %v2451_v16 = vunpack.c.l.b16 %v2443_v61  ;;  %v2151_v50 = vpack.c.bf16 %v2147_v23, %v2147_v23  ;;  %3482 = vmatprep.subr.bf16.mxu0 %v4055_v18  ;;  %v3698_v61 = vld [vmem:[#allocation14 + $0x8] sm:$0xff]  }
 0x883   :  { %2164 = vperm.xlu1 %3583, %v2157_v38   ;;  %v2450_v20 = vunpack.c.l.b16 %v2442_v47  ;;  %v2150_v29 = vpack.c.bf16 %v2145_v46, %v2145_v46  ;;  %v3697_v38 = vld [vmem:[#allocation14] sm:$0xff]  }
 0x884   :  { %v2159_v30 = vunpack.c.l.b16 %v2151_v50  ;;  %v3699_v50 = vld [vmem:[#allocation14 + $0x10] sm:$0xff]  }
 0x885   :  { %v2158_v22 = vunpack.c.l.b16 %v2150_v29 }
 0x886   :  { %2453 = vperm.xlu0 %3582, %v2448_v19   ;;  %v3691_v19 = vld [vmem:[#allocation13 + $0x10] sm:$0xff]  }
 0x887   :  { %2456 = vperm.xlu1 %3583, %v2449_v24  }
 0x88a   :  { %2462 = vperm.xlu0 %3582, %v2451_v16   ;;  %v3692_v16 = vld [vmem:[#allocation13 + $0x18] sm:$0xff]  }
 0x88b   :  { %2459 = vperm.xlu1 %3583, %v2450_v20  }
 0x88e   :  { %2170 = vperm.xlu0 %3582, %v2159_v30  }
 0x88f   :  { %2167 = vperm.xlu1 %3583, %v2158_v22  }
 0x892   :  { %2538 = vperm.xlu0 %3582, %v2143_v62   ;;  %v3689_v62 = vld [vmem:[#allocation13] sm:$0xff]  }
 0x893   :  { %2535 = vperm.xlu1 %3583, %v2141_v43  }
 0x896   :  { %2544 = vperm.xlu0 %3582, %v2147_v23  }
 0x897   :  { %2541 = vperm.xlu1 %3583, %v2145_v46  }
 0x89a   :  { %2574 = vperm.xlu0 %3582, %v2435_v63  }
 0x89b   :  { %2571 = vperm.xlu1 %3583, %v2433_v52  }
 0x89e   :  { %2580 = vperm.xlu0 %3582, %v2439_v58  }
 0x89f   :  { %2577 = vperm.xlu1 %3583, %v2437_v40  }
 0x901   :  { %v2162_v27 = vpop.permute.xlu0 %2161 }
 0x902   :  { %v2165_v17 = vpop.permute.xlu1 %2164  ;;  %v2175_v53 = vrot.slane %v2162_v27, %v4770_v34 }
 0x903   :  { %v2179_v54 = vrot.slane %v2165_v17, %v4770_v34 }
 0x905   :  { %v2454_v42 = vpop.permute.xlu0 %2453  ;;  %v2188_v49 = vsel %vm2036_vm4, %v2179_v54, %v2175_v53  ;;  %v3694_v53 = vld [vmem:[#allocation13 + $0x28] sm:$0xff]   ;;  %v3701_v54 = vld [vmem:[#allocation14 + $0x20] sm:$0xff]  }
 0x906   :  { %v2457_v36 = vpop.permute.xlu1 %2456  ;;  %v2467_v44 = vrot.slane %v2454_v42, %v4770_v34  ;;  %v3693_v42 = vld [vmem:[#allocation13 + $0x20] sm:$0xff]  }
 0x907   :  { %v2471_v32 = vrot.slane %v2457_v36, %v4770_v34  ;;  %v3700_v36 = vld [vmem:[#allocation14 + $0x18] sm:$0xff]  }
 0x909   :  { %v2463_v45 = vpop.permute.xlu0 %2462  ;;  %v2480_v56 = vsel %vm2036_vm4, %v2471_v32, %v2467_v44 }
 0x90a   :  { %v2479_v25 = vrot.slane %v2463_v45, %v4770_v34  ;;  %v2460_v39 = vpop.permute.xlu1 %2459 }
 0x90b   :  { %v2475_v35 = vrot.slane %v2460_v39, %v4770_v34 }
 0x90d   :  { %v2481_v57 = vsel %vm2038_vm3, %v2475_v35, %v2480_v56  ;;  %v2171_v59 = vpop.permute.xlu0 %2170 }
 0x90e   :  { %v2482_v43 = vsel %vm2040_vm5, %v2479_v25, %v2481_v57  ;;  %v2187_v52 = vrot.slane %v2171_v59, %v4770_v34  ;;  %v2168_v60 = vpop.permute.xlu1 %2167  ;;  %v3702_v57 = vld [vmem:[#allocation14 + $0x28] sm:$0xff]   ;;  %v3696_v59 = vld [vmem:[#allocation13 + $0x38] sm:$0xff]  }
 0x90f   :  { %v2483_v63 = vpack.c.b16 %v2482_v43, %v2482_v43  ;;  %v2183_v21 = vrot.slane %v2168_v60, %v4770_v34  ;;  %v3703_v43 = vld [vmem:[#allocation14 + $0x30] sm:$0xff]  }
 0x911   :  { %v2189_v48 = vsel %vm2038_vm3, %v2183_v21, %v2188_v49  ;;  %3479 = vmatmul.mubr.msk.bf16.vlgmr.msra.gmra.mrb[24].mxu1 %vm2192_vm7, %v2483_v63  ;;  %v2539_v28 = vpop.permute.xlu0 %2538 }
 0x912   :  { %v2190_v33 = vsel %vm2040_vm5, %v2187_v52, %v2189_v48  ;;  %3503 = vmatpush3.bf16.msra.mxu1 %v3689_v62  ;;  %v2536_v58 = vpop.permute.xlu1 %2535  ;;  %3518 = vmatprep.mubr.msk.bf16.mxu1 %vm4057_vm0, %v4055_v18  ;;  %v2553_v24 = vrot.slane %v2539_v28, %v4770_v34  ;;  %v3704_v52 = vld [vmem:[#allocation14 + $0x38] sm:$0xff]  }
 0x913   :  { %v2191_v31 = vpack.c.b16 %v2190_v33, %v2190_v33  ;;  %3504 = vmatprep.subr.bf16.mxu1 %v4055_v18  ;;  %v2549_v47 = vrot.slane %v2536_v58, %v4770_v34 }
 0x915   :  { %3473 = vmatmul.mubr.msk.bf16.vlgmr.msra.gmra.mrb[24].mxu0 %vm2192_vm7, %v2191_v31  ;;  %v2545_v40 = vpop.permute.xlu0 %2544  ;;  %v2562_v41 = vsel %vm2036_vm4, %v2553_v24, %v2549_v47 }
 0x916   :  { %3505 = vmatpush3.bf16.msra.mxu1 %v3690_v37  ;;  %v2542_v55 = vpop.permute.xlu1 %2541  ;;  %3483 = vmatpush3.bf16.msra.mxu0 %v3697_v38  ;;  %v2561_v51 = vrot.slane %v2545_v40, %v4770_v34 }
 0x917   :  { %3506 = vmatprep.subr.bf16.mxu1 %v4055_v18  ;;  %3484 = vmatprep.subr.bf16.mxu0 %v4055_v18  ;;  %v2557_v20 = vrot.slane %v2542_v55, %v4770_v34 }
 0x918   :  { %3498 = vmatprep.mubr.msk.bf16.mxu0 %vm4057_vm0, %v4055_v18 }
 0x919   :  { %v2575_v23 = vpop.permute.xlu0 %2574  ;;  %v2563_v44 = vsel %vm2038_vm3, %v2557_v20, %v2562_v41 }
 0x91a   :  { %3507 = vmatpush3.bf16.msra.mxu1 %v3691_v19  ;;  %v2572_v46 = vpop.permute.xlu1 %2571  ;;  %3485 = vmatpush3.bf16.msra.mxu0 %v3698_v61  ;;  %v2589_v29 = vrot.slane %v2575_v23, %v4770_v34  ;;  %v2564_v39 = vsel %vm2040_vm5, %v2561_v51, %v2563_v44  ;;  %v3222_v61 = vld [vmem:[#allocation16] ss:$0 sm:$0xff] }
 0x91b   :  { %3508 = vmatprep.subr.bf16.mxu1 %v4055_v18  ;;  %3486 = vmatprep.subr.bf16.mxu0 %v4055_v18  ;;  %v2585_v30 = vrot.slane %v2572_v46, %v4770_v34 }
 0x91d   :  { %v2581_v22 = vpop.permute.xlu0 %2580  ;;  %v2599_v45 = vsel %vm2598_vm8, %v2589_v29, %v2585_v30 }
 0x91e   :  { %3509 = vmatpush3.bf16.msra.mxu1 %v3692_v16  ;;  %v2597_v27 = vrot.slane %v2581_v22, %v4770_v34  ;;  %v2578_v17 = vpop.permute.xlu1 %2577  ;;  %3487 = vmatpush3.bf16.msra.mxu0 %v3699_v50 }
 0x91f   :  { %v2593_v32 = vrot.slane %v2578_v17, %v4770_v34  ;;  %3510 = vmatprep.subr.bf16.mxu1 %v4055_v18  ;;  %3488 = vmatprep.subr.bf16.mxu0 %v4055_v18  ;;  %v3695_v34 = vld [vmem:[#allocation13 + $0x30] sm:$0xff]  }
 0x921   :  { %v2601_v25 = vsel %vm2600_vm9, %v2593_v32, %v2599_v45 }
 0x922   :  { %v2603_v35 = vsel %vm2602_vm10, %v2597_v27, %v2601_v25  ;;  %3511 = vmatpush3.bf16.msra.mxu1 %v3693_v42  ;;  %3489 = vmatpush3.bf16.msra.mxu0 %v3700_v36 }
 0x923   :  { %v2605_v56 = vsel %vm1706_vm1, %v2564_v39, %v2603_v35  ;;  %3512 = vmatprep.subr.bf16.mxu1 %v4055_v18  ;;  %3490 = vmatprep.subr.bf16.mxu0 %v4055_v18 }
 0x924   :  { %2606 = vst.msk [vmem:[#allocation20] sm:$0xff] %vm2192_vm7, %v2605_v56 }
 0x926   :  { %3513 = vmatpush3.bf16.msra.mxu1 %v3694_v53  ;;  %3491 = vmatpush3.bf16.msra.mxu0 %v3701_v54 }
 0x927   :  { %3514 = vmatprep.subr.bf16.mxu1 %v4055_v18  ;;  %3492 = vmatprep.subr.bf16.mxu0 %v4055_v18 }
 0x92a   :  { %3515 = vmatpush3.bf16.msra.mxu1 %v3695_v34  ;;  %3493 = vmatpush3.bf16.msra.mxu0 %v3702_v57 }
 0x92b   :  { %3516 = vmatprep.subr.bf16.mxu1 %v4055_v18  ;;  %3494 = vmatprep.subr.bf16.mxu0 %v4055_v18 }
 0x92e   :  { %3517 = vmatpush3.bf16.msra.mxu1 %v3696_v59  ;;  %3495 = vmatpush3.bf16.msra.mxu0 %v3703_v43 }
 0x92f   :  { %3496 = vmatprep.subr.bf16.mxu0 %v4055_v18 }
 0x931   :  { %3519 = vmatmul.mubr.bf16.vlgmr.msra.gmra.mrb[28].mxu1 %v4743_v26 }
 0x932   :  { %3497 = vmatpush3.bf16.msra.mxu0 %v3704_v52 }
 0x933   :  { %3522 = vmatprep.subr.bf16.mxu0 %v4055_v18 }
 0x9e4   :  { %v2524_v60 = vpop.f32.mrb[24].mxu1 }
 0x9e5   :  { %v3480_v62 = vpop.f32.mrb[25].mxu1  ;;  %v2608_v21 = vrot.slane %v2524_v60, 4 }
 0x9e6   :  { %v2527_v63 = vpop.f32.mrb[26].mxu1 }
 0x9e7   :  { %v3481_v49 = vpop.f32.mrb[27].mxu1 }
 0x9e8   :  { %v2233_v48 = vpop.f32.mrb[24].mxu0 }
 0x9e9   :  { %v2610_v28 = vsel %vm1706_vm1, %v2233_v48, %v2608_v21  ;;  %v3474_v33 = vpop.f32.mrb[25].mxu0 }
 0x9ea   :  { %v2627_v58 = vpack.c.bf16 %v2610_v28, %v2610_v28  ;;  %v2236_v37 = vpop.f32.mrb[26].mxu0 }
 0x9eb   :  { %v3475_v38 = vpop.f32.mrb[27].mxu0 }
 0x9ec   :  { %3499 = vmatmul.mubr.bf16.vlgmr.msra.gmra.mrb[28].mxu0 %v2627_v58 }
 0x9ed   :  { %3538 = vmatprep.mubr.msk.bf16.mxu0 %vm4057_vm0, %v4055_v18 }
 0xa04   :  { %v2814_v26 = vpop.f32.mrb[28].mxu1 }
 0xa05   :  { %v3520_v31 = vpop.f32.mrb[29].mxu1 }
 0xa06   :  { %v2817_v40 = vpop.f32.mrb[30].mxu1 }
 0xa07   :  { %v3521_v55 = vpop.f32.mrb[31].mxu1 }
 0xabf   :  { %v2726_v19 = vpop.f32.mrb[28].mxu0 }
 0xac0   :  { %v2815_v23 = vadd.f32 %v2814_v26, %v2726_v19  ;;  %v3500_v24 = vpop.f32.mrb[29].mxu0 }
 0xac1   :  { %v2729_v47 = vpop.f32.mrb[30].mxu0 }
 0xac2   :  { %v2827_v46 = vadd.f32 %v3222_v61, %v2815_v23  ;;  %v3501_v16 = vpop.f32.mrb[31].mxu0 }
 0xac4   :  { %v2828_v50 = vpack.c.bf16 %v2827_v46, %v2827_v46 }
 0xac5   :  { %4033 = dma.done.wait [#allocation4], 1024 }
 0xac6   :  { %4034 = vsyncadd [#allocation4], 4294966272  ;;  %3523 = vmatpush3.bf16.msra.mxu0 %v4282_v0  ;;  %v3223_v0 = vld [vmem:[#allocation17] ss:$0 sm:$0xff]  ;;  %3542 = vmatprep.subr.bf16.mxu1 %v4055_v18 }
 0xac7   :  { %3524 = vmatprep.subr.bf16.mxu0 %v4055_v18  ;;  %3558 = vmatprep.mubr.msk.bf16.mxu1 %vm4057_vm0, %v4055_v18 }
 0xaca   :  { %3525 = vmatpush3.bf16.msra.mxu0 %v4287_v1 }
 0xacb   :  { %3526 = vmatprep.subr.bf16.mxu0 %v4055_v18 }
 0xace   :  { %3527 = vmatpush3.bf16.msra.mxu0 %v4292_v2 }
 0xacf   :  { %3528 = vmatprep.subr.bf16.mxu0 %v4055_v18 }
 0xad2   :  { %3529 = vmatpush3.bf16.msra.mxu0 %v4297_v3 }
 0xad3   :  { %3530 = vmatprep.subr.bf16.mxu0 %v4055_v18 }
 0xad6   :  { %3531 = vmatpush3.bf16.msra.mxu0 %v4302_v4 }
 0xad7   :  { %3532 = vmatprep.subr.bf16.mxu0 %v4055_v18 }
 0xada   :  { %3533 = vmatpush3.bf16.msra.mxu0 %v4307_v5 }
 0xadb   :  { %3534 = vmatprep.subr.bf16.mxu0 %v4055_v18 }
 0xade   :  { %3535 = vmatpush3.bf16.msra.mxu0 %v4312_v6 }
 0xadf   :  { %3536 = vmatprep.subr.bf16.mxu0 %v4055_v18 }
 0xae2   :  { %3537 = vmatpush3.bf16.msra.mxu0 %v4317_v7 }
 0xae5   :  { %3539 = vmatmul.mubr.bf16.vlgmr.msra.gmra.mrb[32].mxu0 %v2828_v50 }
 0xbb8   :  { %v2882_v1 = vpop.f32.mrb[32].mxu0 }
 0xbb9   :  { %v2883_v2 = vadd.f32 %v3223_v0, %v2882_v1  ;;  %v3540_v3 = vpop.f32.mrb[33].mxu0 }
 0xbba   :  { %v2885_v20 = vpop.f32.mrb[34].mxu0 }
 0xbbb   :  { %2888 = vst [vmem:[%s5000_s16] sm:$0xff] %v2883_v2  ;;  %v3541_v4 = vpop.f32.mrb[35].mxu0  ;;  %2889 = vmax.xlane.f32.xlu0 %v2883_v2 }
 0xc48   :  { %v4924_v5 = vpop.xlane.xlu0 %2889 }
 0xc49   :  { %v2895_v6 = vsub.f32 %v2883_v2, %v4924_v5  ;;  %v2891_v7 = vsub.f32 -inf, %v4924_v5 }
 0xc4b   :  { %v2896_v29 = vmul.f32 1.442695, %v2895_v6  ;;  %v2892_v22 = vmul.f32 1.442695, %v2891_v7 }
 0xc4d   :  { %3793 = vpow2.f32 %v2896_v29 }
 0xc4e   :  { %3795 = vpow2.f32 %v2892_v22 }
 0xc57   :  { %v3794_v30 = vpop.eup %3793 }
 0xc58   :  { %2898 = vadd.xlane.f32.xlu0 %v3794_v30  ;;  %v3796_v41 = vpop.eup %3795 }
 0xc59   :  { %v2894_v51 = vmul.f32 0.0, %v3796_v41 }
 0xce5   :  { %v2899_v27 = vpop.xlane.xlu0 %2898 }
 0xce6   :  { %v4928_v17 = vadd.f32 %v2899_v27, %v2894_v51 }
 0xce7   :  { %4035 = dma.done.wait [#allocation4 + $0x1], 1024 }
 0xce8   :  { %4036 = vsyncadd [#allocation4 + $0x1], 4294966272  ;;  %3543 = vmatpush3.bf16.msra.mxu1 %v4322_v8  ;;  %v3224_v8 = vld [vmem:[#allocation17 + $0x1] ss:$0 sm:$0xff]  ;;  %s4059_s3 = smov [#allocation19]   ;;  %s4060_s11 = smov [#allocation20]  }
 0xce9   :  { %3544 = vmatprep.subr.bf16.mxu1 %v4055_v18  ;;  %s2990_s4 = sshll.u32 %s4059_s3, 4  ;;  %s3000_s30 = sshll.u32 %s4060_s11, 4  ;;  %s2991_s4 = int_to_ptr.vmem [resolvable:$true] %s2990_s4  ;;  %s3001_s30 = int_to_ptr.vmem [resolvable:$true] %s3000_s30 }
 0xcea   :  { %s3979_s22 = scalar_lea.vmem %s2991_s4, 32  ;;  %p3984_p9 = scmp.lt.s32.totalorder %s2991_s4, %s2991_s4 }
 0xceb   :  { %p3980_p8 = scmp.ne.s32.totalorder %s2991_s4, %s3979_s22  ;;  %p3985_p10 = scmp.lt.s32.totalorder %s3979_s22, %s3979_s22 }
 0xcec   :  { %3545 = vmatpush3.bf16.msra.mxu1 %v4327_v9 }
 0xced   :  { %3546 = vmatprep.subr.bf16.mxu1 %v4055_v18  ;;  %p3986_p11 = por %p3985_p10, %p3984_p9 }
 0xcef   :  { %p3987_p12 = pnand %p3986_p11, %p3980_p8 }
 0xcf0   :  { %3547 = vmatpush3.bf16.msra.mxu1 %v4332_v10 }
 0xcf1   :  { %3548 = vmatprep.subr.bf16.mxu1 %v4055_v18 }
 0xcf4   :  { %3549 = vmatpush3.bf16.msra.mxu1 %v4337_v11 }
 0xcf5   :  { %3550 = vmatprep.subr.bf16.mxu1 %v4055_v18 }
 0xcf8   :  { %3551 = vmatpush3.bf16.msra.mxu1 %v4342_v12 }
 0xcf9   :  { %3552 = vmatprep.subr.bf16.mxu1 %v4055_v18 }
 0xcfc   :  { %3553 = vmatpush3.bf16.msra.mxu1 %v4347_v13 }
 0xcfd   :  { %3554 = vmatprep.subr.bf16.mxu1 %v4055_v18 }
 0xd00   :  { %3555 = vmatpush3.bf16.msra.mxu1 %v4352_v14 }
 0xd01   :  { %3556 = vmatprep.subr.bf16.mxu1 %v4055_v18 }
 0xd04   :  { %3557 = vmatpush3.bf16.msra.mxu1 %v4357_v15 }
 0xd07   :  { %3559 = vmatmul.mubr.bf16.vlgmr.msra.gmra.mrb[32].mxu1 %v2828_v50 }
 0xdda   :  { %v2953_v9 = vpop.f32.mrb[32].mxu1 }
 0xddb   :  { %v2954_v10 = vadd.f32 %v3224_v8, %v2953_v9  ;;  %v3560_v11 = vpop.f32.mrb[33].mxu1 }
 0xddc   :  { %v2956_v42 = vpop.f32.mrb[34].mxu1 }
 0xddd   :  { %v3561_v36 = vpop.f32.mrb[35].mxu1  ;;  %2960 = vmax.xlane.f32.xlu0 %v2954_v10 }
 0xe6a   :  { %v2961_v12 = vpop.xlane.xlu0 %2960 }
 0xe6b   :  { %v2962_v44 = vmax.f32 %v4924_v5, %v2961_v12 }
 0xe6d   :  { %v2967_v13 = vsub.f32 %v2954_v10, %v2962_v44 }
 0xe6f   :  { %v2968_v32 = vmul.f32 1.442695, %v2967_v13 }
 0xe71   :  { %3797 = vpow2.f32 %v2968_v32 }
 0xe7b   :  { %v3798_v45 = vpop.eup %3797 }
 0xe7c   :  { %2970 = vadd.xlane.f32.xlu0 %v3798_v45 }
 0xe7d   :  { %3990 = shalt.err (!%p3987_p12)
}
 0xe7e   :  { %s3991_s27 = scalar_lea.hbm %s5001_s17, 32 }
 0xe7f   :  { %p3992_p13 = scmp.ne.s32.totalorder %s5001_s17, %s3991_s27  ;;  %p3995_p0 = scmp.lt.u32.totalorder %s3991_s27, %s5001_s17 }
 0xe81   :  { %p3997_p1 = pnand %p3995_p0, %p3992_p13 }
 0xe83   :  { %4000 = shalt.err (!%p3997_p1)
}
 0xe84   :  { %2993 = dma.vmem_to_hbm [thread:$0]  %s2991_s4, 32, %s5001_s17, [#allocation7]  }
 0xe85   :  { %s4001_s1 = scalar_lea.vmem %s3001_s30, 128  ;;  %p4006_p3 = scmp.lt.s32.totalorder %s3001_s30, %s3001_s30 }
 0xe86   :  { %p4002_p2 = scmp.ne.s32.totalorder %s3001_s30, %s4001_s1  ;;  %p4007_p4 = scmp.lt.s32.totalorder %s4001_s1, %s4001_s1 }
 0xe88   :  { %p4008_p5 = por %p4007_p4, %p4006_p3 }
 0xe8a   :  { %p4009_p6 = pnand %p4008_p5, %p4002_p2 }
 0xe8c   :  { %4012 = shalt.err (!%p4009_p6)
}
 0xe8d   :  { %s4013_s26 = scalar_lea.hbm %s5002_s18, 128 }
 0xe8e   :  { %p4014_p7 = scmp.ne.s32.totalorder %s5002_s18, %s4013_s26  ;;  %p4017_p8 = scmp.lt.u32.totalorder %s4013_s26, %s5002_s18 }
 0xe90   :  { %p4019_p9 = pnand %p4017_p8, %p4014_p7 }
 0xe92   :  { %4022 = shalt.err (!%p4019_p9)
}
 0xe93   :  { %3003 = dma.vmem_to_hbm [thread:$0]  %s3001_s30, 128, %s5002_s18, [#allocation21]   ;;  %v2963_v14 = vsub.f32 %v4924_v5, %v2962_v44  ;;  %v2976_v56 = vld [vmem:[%s5000_s16] sm:$0xff] }
 0xe95   :  { %v2964_v15 = vmul.f32 1.442695, %v2963_v14 }
 0xe97   :  { %3799 = vpow2.f32 %v2964_v15 }
 0xea1   :  { %v3800_v18 = vpop.eup %3799 }
 0xea2   :  { %v2966_v25 = vmul.f32 %v3800_v18, %v4928_v17 }
 0xf09   :  { %v2971_v39 = vpop.xlane.xlu0 %2970 }
 0xf0a   :  { %v2972_v35 = vadd.f32 %v2971_v39, %v2966_v25 }
 0xf0c   :  { %3801 = vlog2.f32 %v2972_v35 }
 0xf16   :  { %v3802_v53 = vpop.eup %3801 }
 0xf17   :  { %v2974_v54 = vmul.f32 0.6931472, %v3802_v53 }
 0xf19   :  { %v2975_v34 = vadd.f32 %v2974_v54, %v2962_v44 }
 0xf1b   :  { %v2978_v57 = vsub.f32 %v2976_v56, %v2975_v34  ;;  %v2979_v59 = vsub.f32 %v2954_v10, %v2975_v34 }
 0xf1d   :  { %2980 = vst [vmem:[%s5000_s16] sm:$0xff] %v2978_v57  ;;  %2981 = vst [vmem:[%s5000_s16 + $0x8] sm:$0xff] %v2979_v59 }
 0xf1e   :  { %4037 = dma.done.wait [#allocation7], 32  }
 0xf1f   :  { %4038 = vsyncadd [#allocation7], 4294967264 }
 0xf20   :  { %4039 = dma.done.wait [#allocation21], 128  }
 0xf21   :  { %4040 = vsyncadd [#allocation21], 4294967168 }
 0xf22   :  { %3012 = vsyncpa [#allocation6], 1 }
 0xf23   :  { %3013 = vsyncpa [#allocation9], 1 }
 0xf24   :  { %3014 = vsyncpa [#allocation12], 1 }
 0xf25   :  { %3015 = vsyncpa [#allocation15], 1 }
 0xf26   :  { %3016 = vsyncpa [#allocation18], 1 }
 0xf27   :  { %3017 = vsyncpa [#allocation7], 1 }
 0xf28   :  { %3018 = vsyncpa [#allocation21], 1 }
 0xf29   :  { %3019 = vsyncmov [#allocation4] }
 0xf2c   :  { %s3020_s3 = vpop.sfrf %3019 }
 0xf2d   :  { %p3225_p10 = scmp.ne.s32.totalorder %s3020_s3, 0 }
 0xf2f   :  { %3024 = shalt.err (%p3225_p10)  }
 0xf30   :  { %3026 = vsyncmov [#allocation4 + $0x1] }
 0xf33   :  { %s3027_s4 = vpop.sfrf %3026 }
 0xf34   :  { %p3226_p11 = scmp.ne.s32.totalorder %s3027_s4, 0 }
 0xf36   :  { %3031 = shalt.err (%p3226_p11)  }

</bundles_post_ra>
